<compile_context>
chip_gen: v7x
topology: tpu7x:2x2x1
jax: 0.10.0
libtpu: 0.0.40
codegen_flags: <defaults>
</compile_context>

<pallas_src>
import functools
import math

import jax
import jax.numpy as jnp
from jax.experimental import pallas as pl
from jax.experimental.pallas import tpu as pltpu


def _round_up(a: int, b: int) -> int:
    return ((a + b - 1) // b) * b


def _geb_kernel(x_ref, v_ref, w12t_ref, w3t_ref, b3_ref, w4t_ref, b4_ref,
                xo_ref, vo_ref, *, H: int, O: int, mxu_dtype, scalar_activation: bool):
    tn = x_ref.shape[0]

    # v arrives lane-flat: (tn, 3H).  H % 128 == 0 so the three spatial slabs
    # are aligned lane slices; stack them along sublanes so the whole vec1/vec2
    # projection is ONE (3tn, H) x (H, H+O) MXU dot (bf16 in, f32 accumulate).
    vb = v_ref[...].astype(mxu_dtype)                               # (tn, 3H)
    vs = jnp.concatenate([vb[:, :H], vb[:, H:2 * H], vb[:, 2 * H:]], axis=0)  # (3tn, H)
    proj = jnp.dot(vs, w12t_ref[...], preferred_element_type=jnp.float32)     # (3tn, H+O)

    p0, p1, p2 = proj[:tn, :H], proj[tn:2 * tn, :H], proj[2 * tn:, :H]
    q0, q1, q2 = proj[:tn, H:], proj[tn:2 * tn, H:], proj[2 * tn:, H:]

    # Norm over the spatial axis: three aligned VPU FMAs + sqrt.
    # Value-identical to the masked torch.norm (norm of an all-zero row is 0).
    vec1 = jnp.sqrt(p0 * p0 + p1 * p1 + p2 * p2)                    # (tn, H) f32

    # update_net[0]: cat([x, vec1]) is a lane-aligned concat, fused (2H, I) dot.
    xv = jnp.concatenate(
        [x_ref[...].astype(mxu_dtype), vec1.astype(mxu_dtype)], axis=-1)       # (tn, 2H)
    h = jnp.dot(xv, w3t_ref[...], preferred_element_type=jnp.float32) + b3_ref[...]
    h = h * jax.nn.sigmoid(h)                                       # SiLU (f32, EUP)

    # update_net[2]: fused (I, 2O) weight; slice at the lane-aligned O boundary.
    h2 = (jnp.dot(h.astype(mxu_dtype), w4t_ref[...], preferred_element_type=jnp.float32)
          + b4_ref[...])                                            # (tn, 2O)
    x_out = h2[:, :O]
    gate = h2[:, O:]
    if scalar_activation:
        x_out = x_out * jax.nn.sigmoid(x_out)

    xo_ref[...] = x_out.astype(xo_ref.dtype)                        # (tn, O)
    # Single lane-dense (tn, 3O) store for v_out.
    vo_ref[...] = jnp.concatenate(
        [gate * q0, gate * q1, gate * q2], axis=-1).astype(vo_ref.dtype)


def gated_equivariant_block(x, v, params, *, scalar_activation: bool = False,
                            tn: int = 512, use_bf16: bool = True):
    """x: [N, H], v: [N, 3, H] -> (x_out [N, O], v_out [N, 3, O])."""
    N, H = x.shape
    assert v.shape == (N, 3, H)
    w1, w2, w3, b3, w4, b4 = (params[k] for k in ("w1", "w2", "w3", "b3", "w4", "b4"))
    O = w2.shape[0]
    I = w3.shape[0]
    f32 = jnp.float32
    mxu_dtype = jnp.bfloat16 if use_bf16 else jnp.float32

    # Channels padded to lane multiples (no-op when H, O are multiples of 128;
    # the zero-padding preserves the math exactly and padded cols are sliced off).
    Hp = _round_up(H, 128)
    Op = _round_up(O, 128)

    def pad2(a, r, c):
        return jnp.pad(a, ((0, r - a.shape[0]), (0, c - a.shape[1])))

    # ---- trace-time weight prep: transpose, split, fuse output dims, cast ----
    w1t = pad2(w1.T.astype(f32), Hp, Hp)                            # (Hp, Hp)
    w2t = pad2(w2.T.astype(f32), Hp, Op)                            # (Hp, Op)
    w12t = jnp.concatenate([w1t, w2t], axis=1).astype(mxu_dtype)    # (Hp, Hp+Op)

    w3t_full = w3.T.astype(f32)                                     # (2H, I)
    w3t = jnp.concatenate([pad2(w3t_full[:H], Hp, I),
                           pad2(w3t_full[H:], Hp, I)], axis=0).astype(mxu_dtype)  # (2Hp, I)
    b3r = b3.reshape(1, I).astype(f32)                              # (1, I)

    w4t_full = w4.T.astype(f32)                                     # (I, 2O)
    w4t = jnp.concatenate([pad2(w4t_full[:, :O], I, Op),
                           pad2(w4t_full[:, O:], I, Op)], axis=1).astype(mxu_dtype)  # (I, 2Op)
    b4f = b4.reshape(1, 2 * O).astype(f32)
    b4r = jnp.concatenate([pad2(b4f[:, :O], 1, Op),
                           pad2(b4f[:, O:], 1, Op)], axis=1)        # (1, 2Op)

    # ---- inputs: no transpose, no dtype copy; (N,3,H)->(N,3H) reshape is free ----
    if Hp != H:
        x_in = jnp.pad(x, ((0, 0), (0, Hp - H)))
        v_in = jnp.pad(v, ((0, 0), (0, 0), (0, Hp - H))).reshape(N, 3 * Hp)
    else:
        x_in = x
        v_in = v.reshape(N, 3 * H)

    # ---- row tile: multiple of 8, at least ~4 grid steps (v7x has 2 TCs), no N pad ----
    tn = max(8, min(_round_up(tn, 8), _round_up(pl.cdiv(N, 4), 8)))
    grid = (pl.cdiv(N, tn),)

    # ---- advisory cost estimate & explicit VMEM budget ----
    in_itemsize = jnp.dtype(x.dtype).itemsize
    w_itemsize = jnp.dtype(mxu_dtype).itemsize
    weight_bytes = ((Hp * (Hp + Op) + 2 * Hp * I + I * 2 * Op) * w_itemsize
                    + (I + 2 * Op) * 4)
    flops = 2 * N * (3 * Hp * (Hp + Op) + 2 * Hp * I + I * 2 * Op)
    transcendentals = N * (Hp + I + (Op if scalar_activation else 0))
    bytes_accessed = N * 4 * Hp * in_itemsize + N * 4 * Op * 4 + weight_bytes
    cost = pl.CostEstimate(flops=int(flops),
                           transcendentals=int(transcendentals),
                           bytes_accessed=int(bytes_accessed))

    # Double-buffered x/v/out blocks + single-buffered weights, 3x margin for
    # in-kernel intermediates, capped at ~0.8x physical VMEM (matters on v7x).
    io_bytes = 2 * (4 * tn * Hp * in_itemsize + 4 * tn * Op * 4)
    block_bytes = io_bytes + weight_bytes
    try:
        vmem_cap = int(0.8 * pltpu.get_tpu_info().vmem_capacity_bytes)
    except Exception:
        vmem_cap = 48 * 1024 * 1024
    vmem_limit = int(min(vmem_cap, max(32 * 1024 * 1024, 3 * block_bytes)))

    kernel = functools.partial(_geb_kernel, H=Hp, O=Op, mxu_dtype=mxu_dtype,
                               scalar_activation=scalar_activation)

    def wspec(shape):
        # Constant-index weights/biases: single-buffer to halve their VMEM footprint.
        return pl.BlockSpec(shape, lambda i: (0, 0), pipeline_mode=pl.Buffered(1))

    xo, vo = pl.pallas_call(
        kernel,
        grid_spec=pltpu.PrefetchScalarGridSpec(
            num_scalar_prefetch=0,
            grid=grid,
            in_specs=[
                pl.BlockSpec((tn, Hp), lambda i: (i, 0)),        # x
                pl.BlockSpec((tn, 3 * Hp), lambda i: (i, 0)),    # v (lane-flat)
                wspec((Hp, Hp + Op)),                            # w1^T || w2^T
                wspec((2 * Hp, I)),                              # [w3_x^T ; w3_vec^T]
                wspec((1, I)),                                   # b3
                wspec((I, 2 * Op)),                              # w4_x^T || w4_gate^T
                wspec((1, 2 * Op)),                              # b4
            ],
            out_specs=[
                pl.BlockSpec((tn, Op), lambda i: (i, 0)),        # x_out
                pl.BlockSpec((tn, 3 * Op), lambda i: (i, 0)),    # v_out (lane-flat)
            ],
        ),
        out_shape=[
            jax.ShapeDtypeStruct((N, Op), f32),
            jax.ShapeDtypeStruct((N, 3 * Op), f32),
        ],
        compiler_params=pltpu.CompilerParams(
            dimension_semantics=("parallel",),
            vmem_limit_bytes=vmem_limit,
        ),
        cost_estimate=cost,
    )(x_in, v_in, w12t, w3t, b3r, w4t, b4r)

    x_out = xo if Op == O else xo[:, :O]
    v_out = vo.reshape(N, 3, Op)                                  # free reshape
    if Op != O:
        v_out = v_out[:, :, :O]
    return x_out, v_out


def _xavier_uniform(key, shape):
    fan_out, fan_in = shape
    bound = math.sqrt(6.0 / (fan_in + fan_out))
    return jax.random.uniform(key, shape, jnp.float32, -bound, bound)


def init_params(key, hidden_channels, out_channels, intermediate_channels=None):
    if intermediate_channels is None:
        intermediate_channels = hidden_channels
    k1, k2, k3, k4 = jax.random.split(key, 4)
    return {
        "w1": _xavier_uniform(k1, (hidden_channels, hidden_channels)),
        "w2": _xavier_uniform(k2, (out_channels, hidden_channels)),
        "w3": _xavier_uniform(k3, (intermediate_channels, 2 * hidden_channels)),
        "b3": jnp.zeros((1, intermediate_channels), jnp.float32),
        "w4": _xavier_uniform(k4, (2 * out_channels, intermediate_channels)),
        "b4": jnp.zeros((1, 2 * out_channels), jnp.float32),
    }


def _reference(x, v, params, scalar_activation=False):
    """Pure-JAX reference mirroring the PyTorch forward."""
    w1, w2, w3, b3, w4, b4 = (params[k] for k in ("w1", "w2", "w3", "b3", "w4", "b4"))
    vec1_buf = jnp.einsum('nah,kh->nak', v, w1)
    vec1 = jnp.linalg.norm(vec1_buf, axis=-2)
    vec2 = jnp.einsum('nah,kh->nak', v, w2)
    h = jnp.concatenate([x, vec1], axis=-1)
    h = jax.nn.silu(h @ w3.T + b3.reshape(-1))
    h = h @ w4.T + b4.reshape(-1)
    O = w2.shape[0]
    xo, gate = h[:, :O], h[:, O:]
    vo = gate[:, None, :] * vec2
    if scalar_activation:
        xo = jax.nn.silu(xo)
    return xo, vo


if __name__ == "__main__":
    N, H, O = 512, 128, 128
    key = jax.random.PRNGKey(0)
    kx, kv, kp, kp2 = jax.random.split(key, 4)
    x = jax.random.normal(kx, (N, H), jnp.float32)
    v = jax.random.normal(kv, (N, 3, H), jnp.float32)
    v = v.at[0].set(0.0)   # an atom with all-zero vector features (masked case)
    params = init_params(kp, H, O)

    # bf16 MXU path (default)
    x_out, v_out = gated_equivariant_block(x, v, params, scalar_activation=False)
    jax.block_until_ready((x_out, v_out))
    x_exp, v_exp = _reference(x, v, params, scalar_activation=False)
    assert x_out.shape == (N, O) and v_out.shape == (N, 3, O)
    assert jnp.allclose(x_out, x_exp, atol=5e-2, rtol=5e-2)
    assert jnp.allclose(v_out, v_exp, atol=5e-2, rtol=5e-2)

    # Tighter pure-f32 check (no bf16 casts) against the same reference.
    xo32, vo32 = gated_equivariant_block(x, v, params, scalar_activation=False,
                                         use_bf16=False)
    jax.block_until_ready((xo32, vo32))
    assert jnp.allclose(xo32, x_exp, atol=5e-3, rtol=5e-3)
    assert jnp.allclose(vo32, v_exp, atol=5e-3, rtol=5e-3)

    # Unaligned N exercises the ragged-last-block path; also test scalar_activation.
    N2 = 203
    x2 = jax.random.normal(jax.random.PRNGKey(1), (N2, H), jnp.float32)
    v2 = jax.random.normal(jax.random.PRNGKey(2), (N2, 3, H), jnp.float32)
    xo2, vo2 = gated_equivariant_block(x2, v2, params, scalar_activation=True)
    jax.block_until_ready((xo2, vo2))
    xr2, vr2 = _reference(x2, v2, params, scalar_activation=True)
    assert xo2.shape == (N2, O) and vo2.shape == (N2, 3, O)
    assert jnp.allclose(xo2, xr2, atol=5e-2, rtol=5e-2)
    assert jnp.allclose(vo2, vr2, atol=5e-2, rtol=5e-2)

    # Non-128-multiple channels exercise the channel-padding fallback.
    N3, H3, O3 = 64, 96, 64
    params3 = init_params(kp2, H3, O3)
    x3 = jax.random.normal(jax.random.PRNGKey(3), (N3, H3), jnp.float32)
    v3 = jax.random.normal(jax.random.PRNGKey(4), (N3, 3, H3), jnp.float32)
    xo3, vo3 = gated_equivariant_block(x3, v3, params3, scalar_activation=False)
    jax.block_until_ready((xo3, vo3))
    xr3, vr3 = _reference(x3, v3, params3, scalar_activation=False)
    assert xo3.shape == (N3, O3) and vo3.shape == (N3, 3, O3)
    assert jnp.allclose(xo3, xr3, atol=5e-2, rtol=5e-2)
    assert jnp.allclose(vo3, vr3, atol=5e-2, rtol=5e-2)

    print("KERNEL_OK")
</pallas_src>

<mosaic_0001>
module attributes {stable_mosaic.version = 11 : i64} {
  func.func @_geb_kernel(%arg0: i32, %arg1: memref<128x128xf32, #tpu.memory_space<vmem>>, %arg2: memref<128x384xf32, #tpu.memory_space<vmem>>, %arg3: memref<128x256xbf16, #tpu.memory_space<vmem>>, %arg4: memref<256x128xbf16, #tpu.memory_space<vmem>>, %arg5: memref<1x128xf32, #tpu.memory_space<vmem>>, %arg6: memref<128x256xbf16, #tpu.memory_space<vmem>>, %arg7: memref<1x256xf32, #tpu.memory_space<vmem>>, %arg8: memref<128x128xf32, #tpu.memory_space<vmem>>, %arg9: memref<128x384xf32, #tpu.memory_space<vmem>>) attributes {dimension_semantics = [#tpu.dimension_semantics<parallel>], iteration_bounds = array<i64: 4>, scalar_prefetch = 0 : i64, scratch_operands = 0 : i64, tpu.core_type = #tpu.core_type<tc>, window_params = [{transform_indices = @transform_0, window_bounds = array<i64: 128, 128>}, {transform_indices = @transform_1, window_bounds = array<i64: 128, 384>}, {pipeline_mode = #tpu.pipeline_mode<synchronous>, transform_indices = @transform_2, window_bounds = array<i64: 128, 256>}, {pipeline_mode = #tpu.pipeline_mode<synchronous>, transform_indices = @transform_3, window_bounds = array<i64: 256, 128>}, {pipeline_mode = #tpu.pipeline_mode<synchronous>, transform_indices = @transform_4, window_bounds = array<i64: 1, 128>}, {pipeline_mode = #tpu.pipeline_mode<synchronous>, transform_indices = @transform_5, window_bounds = array<i64: 128, 256>}, {pipeline_mode = #tpu.pipeline_mode<synchronous>, transform_indices = @transform_6, window_bounds = array<i64: 1, 256>}, {transform_indices = @transform_7, window_bounds = array<i64: 128, 128>}, {transform_indices = @transform_8, window_bounds = array<i64: 128, 384>}]} {
    %c0 = arith.constant 0 : index
    %c0_0 = arith.constant 0 : index
    %0 = vector.load %arg2[%c0, %c0_0] : memref<128x384xf32, #tpu.memory_space<vmem>>, vector<128x384xf32>
    %1 = arith.truncf %0 : vector<128x384xf32> to vector<128x384xbf16>
    %2 = vector.extract_strided_slice %1 {offsets = [0, 0], sizes = [128, 128], strides = [1, 1]} : vector<128x384xbf16> to vector<128x128xbf16>
    %3 = vector.extract_strided_slice %1 {offsets = [0, 128], sizes = [128, 128], strides = [1, 1]} : vector<128x384xbf16> to vector<128x128xbf16>
    %4 = vector.extract_strided_slice %1 {offsets = [0, 256], sizes = [128, 128], strides = [1, 1]} : vector<128x384xbf16> to vector<128x128xbf16>
    %5 = tpu.concatenate %2, %3, %4 in 0 : vector<128x128xbf16>, vector<128x128xbf16>, vector<128x128xbf16> -> vector<384x128xbf16>
    %c0_1 = arith.constant 0 : index
    %c0_2 = arith.constant 0 : index
    %6 = vector.load %arg3[%c0_1, %c0_2] : memref<128x256xbf16, #tpu.memory_space<vmem>>, vector<128x256xbf16>
    %cst = arith.constant dense<0.000000e+00> : vector<384x256xf32>
    %7 = tpu.matmul %5, %6, %cst {dimension_numbers = #tpu.dot_dimension_numbers<[1], [0], [0], [1], [0, 0, 1, 1], [], []>} : vector<384x128xbf16>, vector<128x256xbf16>, vector<384x256xf32> -> vector<384x256xf32>
    %8 = vector.extract_strided_slice %7 {offsets = [0, 0], sizes = [128, 128], strides = [1, 1]} : vector<384x256xf32> to vector<128x128xf32>
    %9 = vector.extract_strided_slice %7 {offsets = [128, 0], sizes = [128, 128], strides = [1, 1]} : vector<384x256xf32> to vector<128x128xf32>
    %10 = vector.extract_strided_slice %7 {offsets = [256, 0], sizes = [128, 128], strides = [1, 1]} : vector<384x256xf32> to vector<128x128xf32>
    %11 = vector.extract_strided_slice %7 {offsets = [0, 128], sizes = [128, 128], strides = [1, 1]} : vector<384x256xf32> to vector<128x128xf32>
    %12 = vector.extract_strided_slice %7 {offsets = [128, 128], sizes = [128, 128], strides = [1, 1]} : vector<384x256xf32> to vector<128x128xf32>
    %13 = vector.extract_strided_slice %7 {offsets = [256, 128], sizes = [128, 128], strides = [1, 1]} : vector<384x256xf32> to vector<128x128xf32>
    %14 = arith.mulf %8, %8 : vector<128x128xf32>
    %15 = arith.mulf %9, %9 : vector<128x128xf32>
    %16 = arith.addf %14, %15 : vector<128x128xf32>
    %17 = arith.mulf %10, %10 : vector<128x128xf32>
    %18 = arith.addf %16, %17 : vector<128x128xf32>
    %19 = math.sqrt %18 : vector<128x128xf32>
    %c0_3 = arith.constant 0 : index
    %c0_4 = arith.constant 0 : index
    %20 = vector.load %arg1[%c0_3, %c0_4] : memref<128x128xf32, #tpu.memory_space<vmem>>, vector<128x128xf32>
    %21 = arith.truncf %20 : vector<128x128xf32> to vector<128x128xbf16>
    %22 = arith.truncf %19 : vector<128x128xf32> to vector<128x128xbf16>
    %23 = tpu.concatenate %21, %22 in 1 : vector<128x128xbf16>, vector<128x128xbf16> -> vector<128x256xbf16>
    %c0_5 = arith.constant 0 : index
    %c0_6 = arith.constant 0 : index
    %24 = vector.load %arg4[%c0_5, %c0_6] : memref<256x128xbf16, #tpu.memory_space<vmem>>, vector<256x128xbf16>
    %cst_7 = arith.constant dense<0.000000e+00> : vector<128x128xf32>
    %25 = tpu.matmul %23, %24, %cst_7 {dimension_numbers = #tpu.dot_dimension_numbers<[1], [0], [0], [1], [0, 0, 1, 1], [], []>} : vector<128x256xbf16>, vector<256x128xbf16>, vector<128x128xf32> -> vector<128x128xf32>
    %c0_8 = arith.constant 0 : index
    %c0_9 = arith.constant 0 : index
    %26 = vector.load %arg5[%c0_8, %c0_9] : memref<1x128xf32, #tpu.memory_space<vmem>>, vector<1x128xf32>
    %27 = vector.broadcast %26 : vector<1x128xf32> to vector<128x128xf32>
    %28 = arith.addf %25, %27 : vector<128x128xf32>
    %29 = arith.negf %28 : vector<128x128xf32>
    %30 = math.exp %29 : vector<128x128xf32>
    %cst_10 = arith.constant 1.000000e+00 : f32
    %31 = vector.broadcast %cst_10 : f32 to vector<128x128xf32>
    %32 = arith.addf %31, %30 : vector<128x128xf32>
    %33 = arith.divf %31, %32 : vector<128x128xf32>
    %34 = arith.mulf %28, %33 : vector<128x128xf32>
    %35 = arith.truncf %34 : vector<128x128xf32> to vector<128x128xbf16>
    %c0_11 = arith.constant 0 : index
    %c0_12 = arith.constant 0 : index
    %36 = vector.load %arg6[%c0_11, %c0_12] : memref<128x256xbf16, #tpu.memory_space<vmem>>, vector<128x256xbf16>
    %cst_13 = arith.constant dense<0.000000e+00> : vector<128x256xf32>
    %37 = tpu.matmul %35, %36, %cst_13 {dimension_numbers = #tpu.dot_dimension_numbers<[1], [0], [0], [1], [0, 0, 1, 1], [], []>} : vector<128x128xbf16>, vector<128x256xbf16>, vector<128x256xf32> -> vector<128x256xf32>
    %c0_14 = arith.constant 0 : index
    %c0_15 = arith.constant 0 : index
    %38 = vector.load %arg7[%c0_14, %c0_15] : memref<1x256xf32, #tpu.memory_space<vmem>>, vector<1x256xf32>
    %39 = vector.broadcast %38 : vector<1x256xf32> to vector<128x256xf32>
    %40 = arith.addf %37, %39 : vector<128x256xf32>
    %41 = vector.extract_strided_slice %40 {offsets = [0, 0], sizes = [128, 128], strides = [1, 1]} : vector<128x256xf32> to vector<128x128xf32>
    %42 = vector.extract_strided_slice %40 {offsets = [0, 128], sizes = [128, 128], strides = [1, 1]} : vector<128x256xf32> to vector<128x128xf32>
    %c0_16 = arith.constant 0 : index
    %c0_17 = arith.constant 0 : index
    %43 = vector.load %arg8[%c0_16, %c0_17] : memref<128x128xf32, #tpu.memory_space<vmem>>, vector<128x128xf32>
    tpu.vector_store %arg8[%c0_16, %c0_17], %41 {strides = array<i32>} : memref<128x128xf32, #tpu.memory_space<vmem>>, vector<128x128xf32>,
    %44 = arith.mulf %42, %11 : vector<128x128xf32>
    %45 = arith.mulf %42, %12 : vector<128x128xf32>
    %46 = arith.mulf %42, %13 : vector<128x128xf32>
    %47 = tpu.concatenate %44, %45, %46 in 1 : vector<128x128xf32>, vector<128x128xf32>, vector<128x128xf32> -> vector<128x384xf32>
    %c0_18 = arith.constant 0 : index
    %c0_19 = arith.constant 0 : index
    %48 = vector.load %arg9[%c0_18, %c0_19] : memref<128x384xf32, #tpu.memory_space<vmem>>, vector<128x384xf32>
    tpu.vector_store %arg9[%c0_18, %c0_19], %47 {strides = array<i32>} : memref<128x384xf32, #tpu.memory_space<vmem>>, vector<128x384xf32>,
    return
  }
  func.func @transform_0(%arg0: i32) -> (i32, i32) {
    %c0_i32 = arith.constant 0 : i32
    %c0_i32_0 = arith.constant 0 : i32
    return %arg0, %c0_i32 : i32, i32
  }
  func.func @transform_1(%arg0: i32) -> (i32, i32) {
    %c0_i32 = arith.constant 0 : i32
    %c0_i32_0 = arith.constant 0 : i32
    return %arg0, %c0_i32 : i32, i32
  }
  func.func @transform_2(%arg0: i32) -> (i32, i32) {
    %c0_i32 = arith.constant 0 : i32
    %c0_i32_0 = arith.constant 0 : i32
    %c0_i32_1 = arith.constant 0 : i32
    return %c0_i32, %c0_i32_0 : i32, i32
  }
  func.func @transform_3(%arg0: i32) -> (i32, i32) {
    %c0_i32 = arith.constant 0 : i32
    %c0_i32_0 = arith.constant 0 : i32
    %c0_i32_1 = arith.constant 0 : i32
    return %c0_i32, %c0_i32_0 : i32, i32
  }
  func.func @transform_4(%arg0: i32) -> (i32, i32) {
    %c0_i32 = arith.constant 0 : i32
    %c0_i32_0 = arith.constant 0 : i32
    %c0_i32_1 = arith.constant 0 : i32
    return %c0_i32, %c0_i32_0 : i32, i32
  }
  func.func @transform_5(%arg0: i32) -> (i32, i32) {
    %c0_i32 = arith.constant 0 : i32
    %c0_i32_0 = arith.constant 0 : i32
    %c0_i32_1 = arith.constant 0 : i32
    return %c0_i32, %c0_i32_0 : i32, i32
  }
  func.func @transform_6(%arg0: i32) -> (i32, i32) {
    %c0_i32 = arith.constant 0 : i32
    %c0_i32_0 = arith.constant 0 : i32
    %c0_i32_1 = arith.constant 0 : i32
    return %c0_i32, %c0_i32_0 : i32, i32
  }
  func.func @transform_7(%arg0: i32) -> (i32, i32) {
    %c0_i32 = arith.constant 0 : i32
    %c0_i32_0 = arith.constant 0 : i32
    return %arg0, %c0_i32 : i32, i32
  }
  func.func @transform_8(%arg0: i32) -> (i32, i32) {
    %c0_i32 = arith.constant 0 : i32
    %c0_i32_0 = arith.constant 0 : i32
    return %arg0, %c0_i32 : i32, i32
  }
}

</mosaic_0001>

<bundles_post_ra>
// kernel: tpu_custom_call.1
= control target key start
LH: loop header
LB: loop body
LE: loop exit
PB: predicated region body
PF: predicated region fallthrough
CT: control target
= control target key end

     0   :  { %s3701_s0 = inlined_call_operand.hbm [shape: f32[512,128], index: 0, kind: input, shape index: {}]   ;;  %s3702_s1 = inlined_call_operand.hbm [shape: f32[512,384], index: 1, kind: input, shape index: {}]   ;;  %s3703_s2 = inlined_call_operand.hbm [shape: bf16[128,256], index: 2, kind: input, shape index: {}]   ;;  %s3704_s3 = inlined_call_operand.hbm [shape: bf16[256,128], index: 3, kind: input, shape index: {}]   ;;  %s3705_s4 = inlined_call_operand.vmem [shape: f32[1,128], index: 4, kind: input, shape index: {}]   ;;  %s3706_s5 = inlined_call_operand.hbm [shape: bf16[128,256], index: 5, kind: input, shape index: {}]   ;;  %s3707_s6 = inlined_call_operand.vmem [shape: f32[1,256], index: 6, kind: input, shape index: {}]   ;;  %s3708_s7 = inlined_call_operand.hbm [shape: f32[512,128], index: 7, kind: output, shape index: {0}]   ;;  %s3709_s8 = inlined_call_operand.hbm [shape: f32[512,384], index: 8, kind: output, shape index: {1}]  }
   0x1   :  { %3721 = sst [smem:[#allocation37_spill]] %s3701_s0 }
   0x2   :  { %3722 = sst [smem:[#allocation38_spill]] %s3703_s2 }
   0x3   :  { %3723 = sst [smem:[#allocation39_spill]] %s3704_s3 }
   0x4   :  { %3724 = sst [smem:[#allocation40_spill]] %s3706_s5 }
   0x5   :  { %14 = vsyncpa [#allocation3], 0 }
   0x6   :  { %16 = vsyncpa [#allocation3 + $0x1], 0 }
   0x7   :  { %17 = vsyncpa [#allocation6], 0 }
   0x8   :  { %19 = vsyncpa [#allocation6 + $0x1], 0 }
   0x9   :  { %20 = vsyncpa [#allocation9], 0 }
   0xa   :  { %21 = vsyncpa [#allocation4], 0 }
   0xb   :  { %23 = vsyncpa [#allocation4 + $0x1], 0 }
   0xc   :  { %24 = vsyncpa [#allocation13], 0 }
   0xd   :  { %26 = vsyncpa [#allocation13 + $0x1], 0  ;;  %s2720_s27 = smov 0   ;;  %s2722_s28 = smov 0  }
   0xe   :  { %s2724_s29 = smov 0   ;;  %s2726_s30 = smov 0  }
   0xf LB: > { %3725 = sst [smem:[#allocation20_spill]] %s2643_s27  ;;  %s2741_s9 = sadd.s32 4294967295, %s2655_s30   ;;  %s2655_s30 = sphi %s2726_s30, %s3789_s30   ;;  %s2651_s29 = sphi %s2724_s29, %s3788_s29   ;;  %s2647_s28 = sphi %s2722_s28, %s3787_s28   ;;  %s2643_s27 = sphi %s2720_s27, %s3786_s27  }
  0x10   : > { %s1966_s10 = sadd.s32 4294967294, %s2655_s30   ;;  %p52_p0 = scmp.ne.s32.totalorder %s2647_s28, %s2643_s27 }
  0x11   : > { %p3710_p1 = scmp.eq.s32.totalorder %s2741_s9, 0  ;;  %p213_p3 = scmp.eq.s32.totalorder %s1966_s10, 3 }
  0x12   : > { %p1967_p5 = scmp.ge.s32.totalorder %s2655_s30, 1  ;;  %p246_p7 = scmp.lt.s32.totalorder %s2655_s30, 5 }
  0x13   : > { %p2750_p4 = por %p3710_p1, %p52_p0  ;;  %p2755_p6 = por %p213_p3, %p52_p0 }
  0x14   : > { %p2760_p8 = pnand %p1967_p5, %p246_p7  ;;  %s2657_s14 = smov [#allocation7]  }
  0x15   : > { %s3726_s11 = scalar_select %p2750_p4, 1, 0 }
  0x16   : > { %s3727_s12 = scalar_select %p2755_p6, 1, 0 }
  0x17   : > { %s3729_s13 = scalar_select %p2760_p8, 1, 0 }
  0x18   : > { %3728 = sst [smem:[#allocation21_spill]] %s3727_s12  ;;  %s258_s15 = sshll.u32 %s2657_s14, 4  ;;  %s259_s15 = int_to_ptr.vmem [resolvable:$true] %s258_s15 }
  0x19   : > { %p2163_p9 = pneg %p2760_p8  ;;  %s2658_s17 = smov [#allocation8]  }
  0x1a   : > { %s271_s18 = sshll.u32 %s2658_s17, 4  ;;  %s3731_s2 = sld [smem:[#allocation38_spill]]  ;;  %s2772_s18 = int_to_ptr.vmem [resolvable:$true] %s271_s18 }
  0x1b   : > { %p2768_p10 = pnand %p2163_p9, %p3710_p1 }
  0x1d   : > { %p2782_p12 = pneg %p2768_p10 }
  0x20   : > { %s2401_s21 = scalar_lea.hbm %s3731_s2, 2048 }
  0x21   : > { %p2402_p11 = scmp.ne.s32.totalorder %s3731_s2, %s2401_s21  ;;  %p2408_p3 = scmp.lt.u32.totalorder %s2401_s21, %s3731_s2 }
  0x23   : > { %p2404_p13 = pnand %p2782_p12, %p2402_p11 }
  0x25   : > { %p2405_p0 = pneg %p2404_p13 }
  0x27   : > { %p2410_p5 = pnand %p2408_p3, %p2405_p0 }
  0x29   : > { %2413 = shalt.err (!%p2410_p5)
}
  0x2a   : > { %s2414_s10 = scalar_lea.vmem %s259_s15, 2048  ;;  %p2422_p2 = scmp.lt.s32.totalorder %s259_s15, %s259_s15 }
  0x2b   : > { %p2415_p7 = scmp.ne.s32.totalorder %s259_s15, %s2414_s10  ;;  %p2423_p6 = scmp.lt.s32.totalorder %s2414_s10, %s2414_s10 }
  0x2d   : > { %p2417_p9 = pnand %p2415_p7, %p2782_p12  ;;  %p2424_p4 = por %p2423_p6, %p2422_p2 }
  0x2f   : > { %p2418_p1 = pneg %p2417_p9 }
  0x31   : > { %p2425_p8 = pnand %p2424_p4, %p2418_p1 }
  0x33   : > { %2428 = shalt.err (!%p2425_p8)
}
  0x34   : > { %s3714_s14 = smov 128   ;;  %s3716_s17 = smov 8  }
  0x35   : > { %2166 = dma.hbm_to_vmem [thread:$0]  (!%p2768_p10), %s3731_s2, 2048, %s259_s15, [#allocation6], %s3714_s14, %s3714_s14, %s3716_s17  }
  0x36   : > { %s3733_s3 = sld [smem:[#allocation39_spill]] }
  0x3c   : > { %s2429_s23 = scalar_lea.hbm %s3733_s3, 2048 }
  0x3d   : > { %p2430_p1 = scmp.ne.s32.totalorder %s3733_s3, %s2429_s23  ;;  %p2436_p6 = scmp.lt.u32.totalorder %s2429_s23, %s3733_s3 }
  0x3f   : > { %p2432_p2 = pnand %p2430_p1, %p2782_p12 }
  0x41   : > { %p2433_p4 = pneg %p2432_p2 }
  0x43   : > { %p2438_p8 = pnand %p2436_p6, %p2433_p4 }
  0x45   : > { %2441 = shalt.err (!%p2438_p8)
}
  0x46   : > { %s2442_s15 = scalar_lea.vmem %s2772_s18, 2048  ;;  %p2450_p3 = scmp.lt.s32.totalorder %s2772_s18, %s2772_s18 }
  0x47   : > { %p2443_p11 = scmp.ne.s32.totalorder %s2772_s18, %s2442_s15  ;;  %p2451_p5 = scmp.lt.s32.totalorder %s2442_s15, %s2442_s15 }
  0x49   : > { %p2445_p13 = pnand %p2443_p11, %p2782_p12  ;;  %p2452_p7 = por %p2451_p5, %p2450_p3 }
  0x4b   : > { %p2446_p0 = pneg %p2445_p13 }
  0x4d   : > { %p2453_p9 = pnand %p2452_p7, %p2446_p0 }
  0x4f   : > { %2456 = shalt.err (!%p2453_p9)
}
  0x50   : > { %s2661_s19 = smov 64   ;;  %s2662_s12 = smov 4  }
  0x51   : > { %2169 = dma.hbm_to_vmem [thread:$0]  (!%p2768_p10), %s3733_s3, 2048, %s2772_s18, [#allocation9], %s2661_s19, %s2661_s19, %s2662_s12  }
  0x52   : > { %s2663_s22 = smov [#allocation10]   ;;  %s2825_s25 = sadd.s32 1, %s2655_s30  }
  0x53   : > { %s287_s23 = sshll.u32 %s2663_s22, 4  ;;  %s3734_s5 = sld [smem:[#allocation40_spill]]  ;;  %s288_s23 = int_to_ptr.vmem [resolvable:$true] %s287_s23 }
  0x59   : > { %s2457_s15 = scalar_lea.hbm %s3734_s5, 2048 }
  0x5a   : > { %p2458_p1 = scmp.ne.s32.totalorder %s3734_s5, %s2457_s15  ;;  %p2464_p6 = scmp.lt.u32.totalorder %s2457_s15, %s3734_s5 }
  0x5c   : > { %p2460_p2 = pnand %p2458_p1, %p2782_p12 }
  0x5e   : > { %p2461_p4 = pneg %p2460_p2 }
  0x60   : > { %p2466_p8 = pnand %p2464_p6, %p2461_p4 }
  0x62   : > { %2469 = shalt.err (!%p2466_p8)
}
  0x63   : > { %s2470_s18 = scalar_lea.vmem %s288_s23, 2048  ;;  %p2478_p3 = scmp.lt.s32.totalorder %s288_s23, %s288_s23 }
  0x64   : > { %p2471_p11 = scmp.ne.s32.totalorder %s288_s23, %s2470_s18  ;;  %p2479_p5 = scmp.lt.s32.totalorder %s2470_s18, %s2470_s18 }
  0x66   : > { %p2473_p13 = pnand %p2471_p11, %p2782_p12  ;;  %p2480_p7 = por %p2479_p5, %p2478_p3 }
  0x68   : > { %p2474_p0 = pneg %p2473_p13 }
  0x6a   : > { %p2481_p9 = pnand %p2480_p7, %p2474_p0 }
  0x6c   : > { %2484 = shalt.err (!%p2481_p9)
}
  0x6d   : > { %s3735_s14 = smov 8   ;;  %s3736_s17 = smov 128  }
  0x6e   : > { %2172 = dma.hbm_to_vmem [thread:$0]  (!%p2768_p10), %s3734_s5, 2048, %s288_s23, [#allocation9], %s3736_s17, %s3736_s17, %s3735_s14  }
  0x6f   : > { %s36_s24 = ssub.s32 %s2655_s30, %s2825_s25  ;;  %s39_s16 = sadd.s32 1, %s2651_s29 }
  0x70   : > { %p37_p12 = scmp.eq.s32.totalorder %s36_s24, 0  ;;  %p46_p1 = scmp.ne.s32.totalorder %s2651_s29, %s2647_s28 }
  0x71   : > { %p47_p2 = scmp.eq.s32.totalorder %s2655_s30, 0  ;;  %p2190_p4 = scmp.lt.s32.totalorder %s2655_s30, 4 }
  0x72   : > { %s2856_s19 = scalar_select %p37_p12, %s2651_s29, %s39_s16  }
  0x73   : > { %p48_p6 = por %p47_p2, %p46_p1  ;;  %p3737_p8 = scmp.eq.s32.totalorder %s2741_s9, 3 }
  0x74   : > { %s2865_s20 = sand.u32 1, %s2651_s29   ;;  %s2057_s21 = sshll.u32 %s2655_s30, 11 }
  0x75   : > { %p2860_p11 = por %p3737_p8, %p46_p1  ;;  %s1972_s22 = sshll.u32 %s2865_s20, 7 }
  0x76   : > { %s3739_s0 = sld [smem:[#allocation37_spill]]  ;;  %s308_s15 = scalar_lea.vmem [#allocation2], %s1972_s22 }
  0x77   : > { %s315_s18 = sshll.u32 %s308_s15, 4  ;;  %p2874_p10 = pnand %p2190_p4, %p48_p6  ;;  %s2878_s18 = int_to_ptr.vmem [resolvable:$true] %s315_s18 }
  0x78   : > { %s305_s24 = scalar_lea.sflag [#allocation3], %s2865_s20 }
  0x79   : > { %p2487_p0 = pneg %p2874_p10 }
  0x7c   : > { %s2872_s10 = scalar_lea.hbm %s3739_s0, %s2057_s21  ;;  %s2490_s23 = scalar_lea.hbm %s3739_s0, 8192 }
  0x7d   : > { %s2485_s16 = scalar_lea.hbm %s2872_s10, 2048  ;;  %p2491_p7 = scmp.lt.u32.totalorder %s2872_s10, %s3739_s0 }
  0x7e   : > { %p2486_p13 = scmp.ne.s32.totalorder %s2872_s10, %s2485_s16  ;;  %p2492_p9 = scmp.lt.u32.totalorder %s2490_s23, %s2485_s16 }
  0x7f   : > { %p2494_p1 = scmp.lt.u32.totalorder %s2485_s16, %s2872_s10 }
  0x80   : > { %p2488_p3 = pnand %p2487_p0, %p2486_p13  ;;  %p2493_p12 = por %p2492_p9, %p2491_p7 }
  0x82   : > { %p2489_p5 = pneg %p2488_p3  ;;  %p2495_p2 = por %p2494_p1, %p2493_p12 }
  0x84   : > { %p2496_p4 = pnand %p2495_p2, %p2489_p5 }
  0x86   : > { %2499 = shalt.err (!%p2496_p4)
}
  0x87   : > { %s2500_s27 = scalar_lea.vmem %s2878_s18, 2048  ;;  %s2664_s21 = smov [#allocation2]  }
  0x88   : > { %p2501_p6 = scmp.ne.s32.totalorder %s2878_s18, %s2500_s27  ;;  %s2505_s22 = sshll.u32 %s2664_s21, 4  ;;  %s2506_s22 = int_to_ptr.vmem [resolvable:$false] %s2505_s22 }
  0x89   : > { %s2507_s26 = scalar_lea.vmem %s2506_s22, 4096  ;;  %p2508_p3 = scmp.lt.s32.totalorder %s2878_s18, %s2506_s22 }
  0x8a   : > { %p2503_p8 = pnand %p2501_p6, %p2487_p0  ;;  %p2509_p7 = scmp.lt.s32.totalorder %s2507_s26, %s2500_s27 }
  0x8c   : > { %p2504_p13 = pneg %p2503_p8  ;;  %p2510_p9 = por %p2509_p7, %p2508_p3 }
  0x8e   : > { %p2511_p12 = pnand %p2510_p9, %p2504_p13 }
  0x90   : > { %2514 = shalt.err (!%p2511_p12)
}
  0x91   : > { %2176 = dma.hbm_to_vmem [thread:$0]  (!%p2874_p10), %s2872_s10, 2048, %s2878_s18, %s305_s24, %s3736_s17, %s3736_s17, %s3735_s14  }
  0x92   : > { %s2139_s16 = smul.u32 384, %s2865_s20  ;;  %s3741_s0 = sand.u32 1, %s2655_s30  }
  0x93   : > { %s2140_s23 = smul.u32 6144, %s2655_s30  ;;  %s2923_s3 = scalar_lea.sflag [#allocation6], %s3741_s0 }
  0x94   : > { %s329_s22 = scalar_lea.vmem [#allocation5], %s2139_s16  ;;  %s2520_s20 = scalar_lea.hbm %s3702_s1, 24576 }
  0x95   : > { %s2917_s21 = scalar_lea.hbm %s3702_s1, %s2140_s23  ;;  %s337_s26 = sshll.u32 %s329_s22, 4  ;;  %s2919_s26 = int_to_ptr.vmem [resolvable:$true] %s337_s26 }
  0x96   : > { %s2515_s5 = scalar_lea.hbm %s2917_s21, 6144  ;;  %p2521_p4 = scmp.lt.u32.totalorder %s2917_s21, %s3702_s1 }
  0x97   : > { %p2516_p5 = scmp.ne.s32.totalorder %s2917_s21, %s2515_s5  ;;  %p2522_p6 = scmp.lt.u32.totalorder %s2520_s20, %s2515_s5 }
  0x98   : > { %p2524_p13 = scmp.lt.u32.totalorder %s2515_s5, %s2917_s21 }
  0x99   : > { %p2518_p1 = pnand %p2516_p5, %p2487_p0  ;;  %p2523_p8 = por %p2522_p6, %p2521_p4 }
  0x9b   : > { %p2519_p2 = pneg %p2518_p1  ;;  %p2525_p3 = por %p2524_p13, %p2523_p8 }
  0x9d   : > { %p2526_p7 = pnand %p2525_p3, %p2519_p2 }
  0x9f   : > { %2529 = shalt.err (!%p2526_p7)
}
  0xa0   : > { %s2530_s0 = scalar_lea.vmem %s2919_s26, 6144  ;;  %s2665_s24 = smov [#allocation5]  }
  0xa1   : > { %p2531_p9 = scmp.ne.s32.totalorder %s2919_s26, %s2530_s0  ;;  %s2535_s16 = sshll.u32 %s2665_s24, 4  ;;  %s2536_s16 = int_to_ptr.vmem [resolvable:$false] %s2535_s16 }
  0xa2   : > { %s2537_s23 = scalar_lea.vmem %s2536_s16, 12288  ;;  %p2538_p1 = scmp.lt.s32.totalorder %s2919_s26, %s2536_s16 }
  0xa3   : > { %p2533_p12 = pnand %p2531_p9, %p2487_p0  ;;  %p2539_p4 = scmp.lt.s32.totalorder %s2537_s23, %s2530_s0 }
  0xa5   : > { %p2534_p5 = pneg %p2533_p12  ;;  %p2540_p6 = por %p2539_p4, %p2538_p1 }
  0xa7   : > { %p2541_p8 = pnand %p2540_p6, %p2534_p5 }
  0xa9   : > { %2544 = shalt.err (!%p2541_p8)
}
  0xaa   : > { %s2666_s5 = smov 384   ;;  %s2667_s27 = smov 24  }
  0xab   : > { %2179 = dma.hbm_to_vmem [thread:$0]  (!%p2874_p10), %s2917_s21, 6144, %s2919_s26, %s2923_s3, %s2666_s5, %s2666_s5, %s2667_s27  }
  0xac   : > { %p3742_p0 = scmp.ne.s32.totalorder %s3729_s13, 0 }
  0xae   : > { %349 = sbr.rel (%p3742_p0) target bundleno = 1155 (0x483), region = 48 }
  0xb5   : > { %s2952_s15 = sand.u32 1, %s2647_s28   ;;  %p3743_p2 = scmp.ne.s32.totalorder %s3726_s11, 0 }
  0xb6   : > { %s1979_s22 = sshll.u32 %s2952_s15, 7  ;;  %s352_s14 = scalar_lea.sflag [#allocation3], %s2952_s15 }
  0xb7   : > { %s2958_s17 = scalar_lea.vmem [#allocation2], %s1979_s22 }
  0xb8   : > { %2618 = dma.done.wait (%p3743_p2), %s352_s14, 2048  }
  0xb9   : > { %2620 = vsyncadd (%p3743_p2), %s352_s14, 4294965248  ;;  %s360_s3 = sand.u32 1, %s2741_s9   ;;  %s2141_s13 = smul.u32 384, %s2952_s15 }
  0xba   : > { %s361_s2 = scalar_lea.sflag [#allocation6], %s360_s3 }
  0xbb   : > { %s2968_s21 = scalar_lea.vmem [#allocation5], %s2141_s13 }
  0xbc   : > { %2622 = dma.done.wait (%p3743_p2), %s361_s2, 6144  }
  0xbd   : > { %2624 = vsyncadd (%p3743_p2), %s361_s2, 4294961152  ;;  %p3744_p10 = scmp.eq.s32.totalorder %s2741_s9, 0 }
  0xbf   : > { %2626 = dma.done.wait (%p3744_p10), [#allocation6], 2048   ;;  %p3745_p13 = pmov %p3744_p10 }
  0xc0   : > { %p3746_p3 = pmov %p3744_p10 }
  0xc1   : > { %2628 = vsyncadd (%p3745_p13), [#allocation6], 4294965248 }
  0xc2   : > { %2630 = dma.done.wait (%p3746_p3), [#allocation9], 4096   ;;  %p3747_p7 = pmov %p3746_p3 }
  0xc3   : > { %v3719_v0 = vmov 0   ;;  %v2241_v1 = vld [vmem:[#allocation7 + $0x4] ss:$8 sps:$4 sm:$0xff]   ;;  %v2243_v2 = vld [vmem:[#allocation7] ss:$8 sps:$4 sm:$0xff]   ;;  %v427_v18 = vld [vmem:[%s2968_s21 + $0x18] sm:$0xff] }
  0xc4   : > { %2632 = vsyncadd (%p3747_p7), [#allocation9], 4294963200  ;;  %624 = vmatprep.mubr.bf16.mxu0 %v3719_v0  ;;  %824 = vmatprep.mubr.bf16.mxu1 %v3719_v0  ;;  %v2244_v3 = vld [vmem:[#allocation7 + $0x14] ss:$8 sps:$4 sm:$0xff]   ;;  %v2246_v4 = vld [vmem:[#allocation7 + $0x10] ss:$8 sps:$4 sm:$0xff]  }
  0xc5   : > { %592 = vmatprep.subr.bf16.mxu0 %v2241_v1  ;;  %2123 = vmatprep.subr.bf16.mxu1 %v2241_v1  ;;  %v2247_v5 = vld [vmem:[#allocation7 + $0x24] ss:$8 sps:$4 sm:$0xff]   ;;  %v2249_v6 = vld [vmem:[#allocation7 + $0x20] ss:$8 sps:$4 sm:$0xff]   ;;  %v2250_v7 = vld [vmem:[#allocation7 + $0x34] ss:$8 sps:$4 sm:$0xff]  }
  0xc6   : > { %593 = vmatpush1.bf16.msra.mxu0 %v2243_v2  ;;  %2131 = vmatpush1.bf16.msra.mxu1 %v2243_v2  ;;  %v2252_v8 = vld [vmem:[#allocation7 + $0x30] ss:$8 sps:$4 sm:$0xff]   ;;  %v2253_v9 = vld [vmem:[#allocation7 + $0x44] ss:$8 sps:$4 sm:$0xff]   ;;  %v2255_v10 = vld [vmem:[#allocation7 + $0x40] ss:$8 sps:$4 sm:$0xff]  }
  0xc7   : > { %594 = vmatprep.subr.bf16.mxu0 %v2244_v3  ;;  %2124 = vmatprep.subr.bf16.mxu1 %v2244_v3  ;;  %v2256_v11 = vld [vmem:[#allocation7 + $0x54] ss:$8 sps:$4 sm:$0xff]   ;;  %v2258_v12 = vld [vmem:[#allocation7 + $0x50] ss:$8 sps:$4 sm:$0xff]   ;;  %v2259_v13 = vld [vmem:[#allocation7 + $0x64] ss:$8 sps:$4 sm:$0xff]  }
  0xc8   : > { %v2261_v14 = vld [vmem:[#allocation7 + $0x60] ss:$8 sps:$4 sm:$0xff]   ;;  %v2262_v15 = vld [vmem:[#allocation7 + $0x74] ss:$8 sps:$4 sm:$0xff]   ;;  %v2264_v16 = vld [vmem:[#allocation7 + $0x70] ss:$8 sps:$4 sm:$0xff]  }
  0xc9   : > { %v424_v17 = vld [vmem:[%s2968_s21] sm:$0xff]  ;;  %v450_v19 = vld [vmem:[%s2968_s21 + $0xd0] sm:$0xff]  ;;  %v453_v20 = vld [vmem:[%s2968_s21 + $0xe8] sm:$0xff]  ;;  %s3470_s18 = scalar_lea.vmem [#allocation11], %s1979_s22  ;;  %s3481_s0 = scalar_lea.vmem [#allocation12], %s2141_s13 }
  0xca   : > { %595 = vmatpush1.bf16.msra.mxu0 %v2246_v4  ;;  %2132 = vmatpush1.bf16.msra.mxu1 %v2246_v4  ;;  %v472_v21 = vpack.c.bf16 %v427_v18, %v424_v17  ;;  %v486_v22 = vpack.c.bf16 %v453_v20, %v450_v19  ;;  %v430_v23 = vld [vmem:[%s2968_s21 + $0x30] sm:$0xff]  ;;  %v433_v24 = vld [vmem:[%s2968_s21 + $0x48] sm:$0xff]  ;;  %v456_v25 = vld [vmem:[%s2968_s21 + $0x100] sm:$0xff]  ;;  %s2058_s24 = sshll.u32 %s2741_s9, 11  ;;  %s1793_s16 = sshll.u32 %s3470_s18, 4  ;;  %s3611_s16 = int_to_ptr.vmem [resolvable:$true] %s1793_s16 }
  0xcb   : > { %596 = vmatprep.subr.bf16.mxu0 %v2247_v5  ;;  %2125 = vmatprep.subr.bf16.mxu1 %v2247_v5  ;;  %v459_v26 = vld [vmem:[%s2968_s21 + $0x118] sm:$0xff]  ;;  %v475_v27 = vpack.c.bf16 %v433_v24, %v430_v23  ;;  %v436_v29 = vld [vmem:[%s2968_s21 + $0x60] sm:$0xff]  ;;  %v462_v31 = vld [vmem:[%s2968_s21 + $0x130] sm:$0xff]  ;;  %s2142_s23 = smul.u32 6144, %s2741_s9  ;;  %s3607_s22 = scalar_lea.hbm %s3708_s7, %s2058_s24 }
  0xcc   : > { %v489_v28 = vpack.c.bf16 %v459_v26, %v456_v25  ;;  %v439_v30 = vld [vmem:[%s2968_s21 + $0x78] sm:$0xff]  ;;  %v465_v32 = vld [vmem:[%s2968_s21 + $0x148] sm:$0xff]  ;;  %v442_v35 = vld [vmem:[%s2968_s21 + $0x90] sm:$0xff]  ;;  %s1810_s14 = sshll.u32 %s3481_s0, 4  ;;  %s1775_s13 = scalar_lea.sflag [#allocation4], %s2952_s15  ;;  %s3624_s14 = int_to_ptr.vmem [resolvable:$true] %s1810_s14 }
  0xcd   : > { %v478_v33 = vpack.c.bf16 %v439_v30, %v436_v29  ;;  %v492_v34 = vpack.c.bf16 %v465_v32, %v462_v31  ;;  %v445_v36 = vld [vmem:[%s2968_s21 + $0xa8] sm:$0xff]  ;;  %v468_v37 = vld [vmem:[%s2968_s21 + $0x160] sm:$0xff]  ;;  %v471_v38 = vld [vmem:[%s2968_s21 + $0x178] sm:$0xff]  ;;  %s3622_s3 = scalar_lea.hbm %s3709_s8, %s2142_s23  ;;  %s2545_s2 = scalar_lea.vmem %s3611_s16, 2048 }
  0xce   : > { %597 = vmatpush1.bf16.msra.mxu0 %v2249_v6  ;;  %2133 = vmatpush1.bf16.msra.mxu1 %v2249_v6  ;;  %v481_v39 = vpack.c.bf16 %v445_v36, %v442_v35  ;;  %v495_v40 = vpack.c.bf16 %v471_v38, %v468_v37  ;;  %v448_v41 = vld [vmem:[%s2968_s21 + $0xc0] sm:$0xff]  ;;  %v451_v42 = vld [vmem:[%s2968_s21 + $0xd8] sm:$0xff]  ;;  %v454_v44 = vld [vmem:[%s2968_s21 + $0xf0] sm:$0xff]  ;;  %p2546_p9 = scmp.ne.s32.totalorder %s3611_s16, %s2545_s2 }
  0xcf   : > { %598 = vmatprep.subr.bf16.mxu0 %v2250_v7  ;;  %2126 = vmatprep.subr.bf16.mxu1 %v2250_v7  ;;  %v484_v43 = vpack.c.bf16 %v451_v42, %v448_v41  ;;  %v457_v45 = vld [vmem:[%s2968_s21 + $0x108] sm:$0xff]  ;;  %v460_v47 = vld [vmem:[%s2968_s21 + $0x120] sm:$0xff]  ;;  %v463_v48 = vld [vmem:[%s2968_s21 + $0x138] sm:$0xff] }
  0xd0   : > { %v487_v46 = vpack.c.bf16 %v457_v45, %v454_v44  ;;  %v490_v49 = vpack.c.bf16 %v463_v48, %v460_v47  ;;  %v466_v50 = vld [vmem:[%s2968_s21 + $0x150] sm:$0xff]  ;;  %v469_v51 = vld [vmem:[%s2968_s21 + $0x168] sm:$0xff]  ;;  %v428_v54 = vld [vmem:[%s2968_s21 + $0x20] sm:$0xff]  ;;  %p2547_p12 = pnand %p2546_p9, %p2860_p11 }
  0xd1   : > { %v493_v52 = vpack.c.bf16 %v469_v51, %v466_v50  ;;  %v425_v53 = vld [vmem:[%s2968_s21 + $0x8] sm:$0xff]  ;;  %v431_v56 = vld [vmem:[%s2968_s21 + $0x38] sm:$0xff]  ;;  %v434_v57 = vld [vmem:[%s2968_s21 + $0x50] sm:$0xff] }
  0xd2   : > { %599 = vmatpush1.bf16.msra.mxu0 %v2252_v8  ;;  %2134 = vmatpush1.bf16.msra.mxu1 %v2252_v8  ;;  %v473_v55 = vpack.c.bf16 %v428_v54, %v425_v53  ;;  %v476_v58 = vpack.c.bf16 %v434_v57, %v431_v56  ;;  %v437_v59 = vld [vmem:[%s2968_s21 + $0x68] sm:$0xff]  ;;  %v440_v60 = vld [vmem:[%s2968_s21 + $0x80] sm:$0xff]  ;;  %v443_v62 = vld [vmem:[%s2968_s21 + $0x98] sm:$0xff]  ;;  %p2548_p5 = pneg %p2547_p12 }
  0xd3   : > { %600 = vmatprep.subr.bf16.mxu0 %v2253_v9  ;;  %2127 = vmatprep.subr.bf16.mxu1 %v2253_v9  ;;  %v479_v61 = vpack.c.bf16 %v440_v60, %v437_v59  ;;  %v446_v63 = vld [vmem:[%s2968_s21 + $0xb0] sm:$0xff]  ;;  %v449_v2 = vld [vmem:[%s2968_s21 + $0xc8] sm:$0xff]  ;;  %v452_v3 = vld [vmem:[%s2968_s21 + $0xe0] sm:$0xff] }
  0xd4   : > { %v482_v1 = vpack.c.bf16 %v446_v63, %v443_v62  ;;  %v485_v4 = vpack.c.bf16 %v452_v3, %v449_v2  ;;  %v455_v5 = vld [vmem:[%s2968_s21 + $0xf8] sm:$0xff]  ;;  %v458_v6 = vld [vmem:[%s2968_s21 + $0x110] sm:$0xff]  ;;  %v461_v8 = vld [vmem:[%s2968_s21 + $0x128] sm:$0xff] }
  0xd5   : > { %v488_v7 = vpack.c.bf16 %v458_v6, %v455_v5  ;;  %v464_v9 = vld [vmem:[%s2968_s21 + $0x140] sm:$0xff]  ;;  %v435_v18 = vld [vmem:[%s2968_s21 + $0x58] sm:$0xff]  ;;  %v438_v20 = vld [vmem:[%s2968_s21 + $0x70] sm:$0xff] }
  0xd6   : > { %601 = vmatpush1.bf16.msra.mxu0 %v2255_v10  ;;  %2135 = vmatpush1.bf16.msra.mxu1 %v2255_v10  ;;  %v491_v10 = vpack.c.bf16 %v464_v9, %v461_v8  ;;  %v432_v17 = vld [vmem:[%s2968_s21 + $0x40] sm:$0xff]  ;;  %v447_v24 = vld [vmem:[%s2968_s21 + $0xb8] sm:$0xff]  ;;  %v2268_v29 = vld [vmem:[#allocation8 + $0x8] sm:$0xff]  }
  0xd7   : > { %602 = vmatprep.subr.bf16.mxu0 %v2256_v11  ;;  %2128 = vmatprep.subr.bf16.mxu1 %v2256_v11  ;;  %v467_v11 = vld [vmem:[%s2968_s21 + $0x158] sm:$0xff]  ;;  %v477_v19 = vpack.c.bf16 %v435_v18, %v432_v17  ;;  %v444_v23 = vld [vmem:[%s2968_s21 + $0xa0] sm:$0xff]  ;;  %v2269_v30 = vld [vmem:[#allocation8 + $0x50] sm:$0xff]  }
  0xd8   : > { %v483_v25 = vpack.c.bf16 %v447_v24, %v444_v23  ;;  %v2265_v26 = vld [vmem:[#allocation8 + $0x40] sm:$0xff]   ;;  %v2272_v41 = vld [vmem:[#allocation8 + $0x18] sm:$0xff]   ;;  %v2276_v53 = vld [vmem:[#allocation8 + $0x28] sm:$0xff]  }
  0xd9   : > { %v2273_v42 = vld [vmem:[#allocation8 + $0x60] sm:$0xff]   ;;  %v2277_v54 = vld [vmem:[#allocation8 + $0x70] sm:$0xff]   ;;  %v2280_v2 = vld [vmem:[#allocation8 + $0x38] sm:$0xff]  }
  0xda   : > { %603 = vmatpush1.bf16.msra.mxu0 %v2258_v12  ;;  %2136 = vmatpush1.bf16.msra.mxu1 %v2258_v12  ;;  %v470_v12 = vld [vmem:[%s2968_s21 + $0x170] sm:$0xff]  ;;  %v2274_v45 = vld [vmem:[#allocation8 + $0x20] sm:$0xff]  }
  0xdb   : > { %604 = vmatprep.subr.bf16.mxu0 %v2259_v13  ;;  %2129 = vmatprep.subr.bf16.mxu1 %v2259_v13  ;;  %v494_v13 = vpack.c.bf16 %v470_v12, %v467_v11  ;;  %v2278_v57 = vld [vmem:[#allocation8 + $0x30] sm:$0xff]  }
  0xde   : > { %605 = vmatpush1.bf16.msra.mxu0 %v2261_v14  ;;  %2137 = vmatpush1.bf16.msra.mxu1 %v2261_v14  ;;  %v426_v14 = vld [vmem:[%s2968_s21 + $0x10] sm:$0xff] }
  0xdf   : > { %606 = vmatprep.subr.bf16.mxu0 %v2262_v15  ;;  %2130 = vmatprep.subr.bf16.mxu1 %v2262_v15  ;;  %v429_v15 = vld [vmem:[%s2968_s21 + $0x28] sm:$0xff] }
  0xe2   : > { %607 = vmatpush1.bf16.msra.mxu0 %v2264_v16  ;;  %2138 = vmatpush1.bf16.msra.mxu1 %v2264_v16  ;;  %v474_v16 = vpack.c.bf16 %v429_v15, %v426_v14 }
  0xe3   : > { %2059 = vmatprep.subr.bf16.mxu1 %v2265_v26 }
  0xe5   : > { %625 = vmatmul.mubr.bf16.vlgmr.msra.gmra.mrb[0].mxu0 %v472_v21  ;;  %825 = vmatmul.mubr.bf16.vlgmr.msra.gmra.mrb[0].mxu1 %v486_v22  ;;  %v441_v21 = vld [vmem:[%s2968_s21 + $0x88] sm:$0xff]  ;;  %s2669_s21 = smov [#allocation11]  }
  0xe6   : > { %634 = vmatprep.mubr.bf16.mxu0 %v3719_v0  ;;  %834 = vmatprep.mubr.bf16.mxu1 %v3719_v0  ;;  %v480_v22 = vpack.c.bf16 %v441_v21, %v438_v20  ;;  %s2549_s11 = sshll.u32 %s2669_s21, 4  ;;  %s2550_s11 = int_to_ptr.vmem [resolvable:$false] %s2549_s11 }
  0xe7   : > { %s2551_s26 = scalar_lea.vmem %s2550_s11, 4096  ;;  %p2552_p1 = scmp.lt.s32.totalorder %s3611_s16, %s2550_s11 }
  0xe8   : > { %p2553_p4 = scmp.lt.s32.totalorder %s2551_s26, %s2545_s2 }
  0xea   : > { %p2554_p6 = por %p2553_p4, %p2552_p1 }
  0xec   : > { %p2555_p8 = pnand %p2554_p6, %p2548_p5 }
  0xed   : > { %635 = vmatmul.mubr.bf16.gmra.mrb[4].mxu0 %v475_v27  ;;  %835 = vmatmul.mubr.bf16.gmra.mrb[4].mxu1 %v489_v28  ;;  %v2266_v27 = vld [vmem:[#allocation8] sm:$0xff]   ;;  %v2267_v28 = vld [vmem:[#allocation8 + $0x48] sm:$0xff]  }
  0xee   : > { %644 = vmatprep.mubr.bf16.mxu0 %v3719_v0  ;;  %844 = vmatprep.mubr.bf16.mxu1 %v3719_v0 }
  0xef   : > { %2060 = vmatpush3.bf16.msra.mxu1 %v2266_v27 }
  0xf0   : > { %2061 = vmatprep.subr.bf16.mxu1 %v2267_v28 }
  0xf3   : > { %2062 = vmatpush3.bf16.msra.mxu1 %v2268_v29 }
  0xf4   : > { %2063 = vmatprep.subr.bf16.mxu1 %v2269_v30 }
  0xf5   : > { %645 = vmatmul.mubr.bf16.gmra.mrb[8].mxu0 %v478_v33  ;;  %845 = vmatmul.mubr.bf16.gmra.mrb[8].mxu1 %v492_v34  ;;  %v2270_v33 = vld [vmem:[#allocation8 + $0x10] sm:$0xff]  }
  0xf6   : > { %654 = vmatprep.mubr.bf16.mxu0 %v3719_v0  ;;  %854 = vmatprep.mubr.bf16.mxu1 %v3719_v0 }
  0xf7   : > { %2064 = vmatpush3.bf16.msra.mxu1 %v2270_v33 }
  0xfd   : > { %655 = vmatmul.mubr.bf16.gmra.mrb[12].mxu0 %v481_v39  ;;  %855 = vmatmul.mubr.bf16.gmra.mrb[12].mxu1 %v495_v40  ;;  %v2271_v40 = vld [vmem:[#allocation8 + $0x58] sm:$0xff]  }
  0xfe   : > { %664 = vmatprep.mubr.bf16.mxu0 %v3719_v0  ;;  %2065 = vmatprep.subr.bf16.mxu1 %v2271_v40 }
  0xff   : > { %2066 = vmatpush3.bf16.msra.mxu1 %v2272_v41 }
 0x100   : > { %2067 = vmatprep.subr.bf16.mxu1 %v2273_v42 }
 0x103   : > { %2068 = vmatpush3.bf16.msra.mxu1 %v2274_v45 }
 0x105   : > { %665 = vmatmul.mubr.bf16.gmra.mrb[16].mxu0 %v484_v43 }
 0x106   : > { %674 = vmatprep.mubr.bf16.mxu0 %v3719_v0 }
 0x10d   : > { %675 = vmatmul.mubr.bf16.gmra.mrb[20].mxu0 %v487_v46 }
 0x10e   : > { %684 = vmatprep.mubr.bf16.mxu0 %v3719_v0 }
 0x115   : > { %685 = vmatmul.mubr.bf16.gmra.mrb[24].mxu0 %v490_v49 }
 0x116   : > { %694 = vmatprep.mubr.bf16.mxu0 %v3719_v0 }
 0x11d   : > { %695 = vmatmul.mubr.bf16.gmra.mrb[28].mxu0 %v493_v52  ;;  %v2275_v52 = vld [vmem:[#allocation8 + $0x68] sm:$0xff]  }
 0x11e   : > { %704 = vmatprep.mubr.bf16.mxu0 %v3719_v0  ;;  %2069 = vmatprep.subr.bf16.mxu1 %v2275_v52 }
 0x11f   : > { %2070 = vmatpush3.bf16.msra.mxu1 %v2276_v53 }
 0x120   : > { %2071 = vmatprep.subr.bf16.mxu1 %v2277_v54 }
 0x123   : > { %2072 = vmatpush3.bf16.msra.mxu1 %v2278_v57 }
 0x125   : > { %705 = vmatmul.mubr.bf16.gmra.mrb[32].mxu0 %v473_v55 }
 0x126   : > { %714 = vmatprep.mubr.bf16.mxu0 %v3719_v0 }
 0x12d   : > { %715 = vmatmul.mubr.bf16.gmra.mrb[36].mxu0 %v476_v58 }
 0x12e   : > { %724 = vmatprep.mubr.bf16.mxu0 %v3719_v0 }
 0x135   : > { %725 = vmatmul.mubr.bf16.gmra.mrb[40].mxu0 %v479_v61 }
 0x136   : > { %734 = vmatprep.mubr.bf16.mxu0 %v3719_v0 }
 0x13d   : > { %735 = vmatmul.mubr.bf16.gmra.mrb[44].mxu0 %v482_v1  ;;  %v2279_v1 = vld [vmem:[#allocation8 + $0x78] sm:$0xff]  }
 0x13e   : > { %744 = vmatprep.mubr.bf16.mxu0 %v3719_v0  ;;  %2073 = vmatprep.subr.bf16.mxu1 %v2279_v1 }
 0x13f   : > { %2074 = vmatpush3.bf16.msra.mxu1 %v2280_v2 }
 0x145   : > { %745 = vmatmul.mubr.bf16.gmra.mrb[48].mxu0 %v485_v4 }
 0x146   : > { %754 = vmatprep.mubr.bf16.mxu0 %v3719_v0 }
 0x14d   : > { %755 = vmatmul.mubr.bf16.gmra.mrb[52].mxu0 %v488_v7 }
 0x14e   : > { %764 = vmatprep.mubr.bf16.mxu0 %v3719_v0 }
 0x155   : > { %765 = vmatmul.mubr.bf16.gmra.mrb[56].mxu0 %v491_v10 }
 0x156   : > { %774 = vmatprep.mubr.bf16.mxu0 %v3719_v0 }
 0x15d   : > { %775 = vmatmul.mubr.bf16.gmra.mrb[60].mxu0 %v494_v13 }
 0x15e   : > { %784 = vmatprep.mubr.bf16.mxu0 %v3719_v0 }
 0x165   : > { %785 = vmatmul.mubr.bf16.gmra.mrb[64].mxu0 %v474_v16 }
 0x166   : > { %794 = vmatprep.mubr.bf16.mxu0 %v3719_v0 }
 0x16d   : > { %795 = vmatmul.mubr.bf16.gmra.mrb[68].mxu0 %v477_v19 }
 0x16e   : > { %804 = vmatprep.mubr.bf16.mxu0 %v3719_v0 }
 0x175   : > { %805 = vmatmul.mubr.bf16.gmra.mrb[72].mxu0 %v480_v22 }
 0x176   : > { %814 = vmatprep.mubr.bf16.mxu0 %v3719_v0 }
 0x17d   : > { %815 = vmatmul.mubr.bf16.gmra.mrb[76].mxu0 %v483_v25 }
 0x1b8   : > { %v3054_v31 = vpop.f32.mrb[0].mxu0  ;;  %v3056_v32 = vpop.f32.mrb[0].mxu1 }
 0x1b9   : > { %v3058_v34 = vpop.f32.mrb[1].mxu0  ;;  %v3060_v35 = vpop.f32.mrb[1].mxu1  ;;  %v865_v28 = vmul.f32 %v3054_v31, %v3054_v31 }
 0x1ba   : > { %v3062_v36 = vpop.f32.mrb[2].mxu0  ;;  %v3064_v37 = vpop.f32.mrb[2].mxu1 }
 0x1bb   : > { %v3066_v38 = vpop.f32.mrb[3].mxu0  ;;  %v3068_v39 = vpop.f32.mrb[3].mxu1  ;;  %v866_v40 = vmul.f32 %v3062_v36, %v3062_v36 }
 0x1c0   : > { %v3070_v43 = vpop.f32.mrb[4].mxu0  ;;  %v3072_v44 = vpop.f32.mrb[4].mxu1 }
 0x1c1   : > { %v3074_v46 = vpop.f32.mrb[5].mxu0  ;;  %v3076_v47 = vpop.f32.mrb[5].mxu1  ;;  %v867_v54 = vmul.f32 %v3070_v43, %v3070_v43  ;;  %v2283_v43 = vld [vmem:[#allocation10 + $0x4] ss:$8 sps:$4 sm:$0xff]  }
 0x1c2   : > { %v3078_v48 = vpop.f32.mrb[6].mxu0  ;;  %v3080_v49 = vpop.f32.mrb[6].mxu1  ;;  %1549 = vmatprep.subr.bf16.mxu1 %v2283_v43 }
 0x1c3   : > { %v3082_v50 = vpop.f32.mrb[7].mxu0  ;;  %v3084_v51 = vpop.f32.mrb[7].mxu1  ;;  %v868_v2 = vmul.f32 %v3078_v48, %v3078_v48 }
 0x1c4   : > { %3748 = vst [vmem:[#allocation22_spill] sm:$0xff] %v3084_v51 }
 0x1c8   : > { %v646_v55 = vpop.f32.mrb[8].mxu0  ;;  %v3086_v56 = vpop.f32.mrb[8].mxu1 }
 0x1c9   : > { %v3088_v58 = vpop.f32.mrb[9].mxu0  ;;  %v3090_v59 = vpop.f32.mrb[9].mxu1 }
 0x1ca   : > { %3749 = vst [vmem:[#allocation23_spill] sm:$0xff] %v3090_v59  ;;  %v650_v60 = vpop.f32.mrb[10].mxu0  ;;  %v3092_v61 = vpop.f32.mrb[10].mxu1 }
 0x1cb   : > { %v3094_v62 = vpop.f32.mrb[11].mxu0  ;;  %v3096_v63 = vpop.f32.mrb[11].mxu1 }
 0x1cc   : > { %3750 = vst [vmem:[#allocation24_spill] sm:$0xff] %v3096_v63 }
 0x1d0   : > { %v656_v3 = vpop.f32.mrb[12].mxu0  ;;  %v3098_v4 = vpop.f32.mrb[12].mxu1 }
 0x1d1   : > { %v3100_v5 = vpop.f32.mrb[13].mxu0  ;;  %v3102_v6 = vpop.f32.mrb[13].mxu1 }
 0x1d2   : > { %3751 = vst [vmem:[#allocation25_spill] sm:$0xff] %v3102_v6  ;;  %v660_v7 = vpop.f32.mrb[14].mxu0  ;;  %v3104_v8 = vpop.f32.mrb[14].mxu1 }
 0x1d3   : > { %v3106_v9 = vpop.f32.mrb[15].mxu0  ;;  %v3126_v21 = vpop.f32.mrb[15].mxu1 }
 0x1d4   : > { %3754 = vst [vmem:[#allocation28_spill] sm:$0xff] %v3126_v21  ;;  %v870_v21 = vmul.f32 %v650_v60, %v650_v60 }
 0x1d8   : > { %v666_v10 = vpop.f32.mrb[16].mxu0 }
 0x1d9   : > { %v3108_v11 = vpop.f32.mrb[17].mxu0 }
 0x1da   : > { %v670_v12 = vpop.f32.mrb[18].mxu0 }
 0x1db   : > { %v3110_v13 = vpop.f32.mrb[19].mxu0 }
 0x1e0   : > { %v3112_v14 = vpop.f32.mrb[20].mxu0 }
 0x1e1   : > { %v3114_v15 = vpop.f32.mrb[21].mxu0 }
 0x1e2   : > { %v3116_v16 = vpop.f32.mrb[22].mxu0 }
 0x1e3   : > { %v3118_v17 = vpop.f32.mrb[23].mxu0 }
 0x1e4   : > { %3752 = vst [vmem:[#allocation26_spill] sm:$0xff] %v3118_v17  ;;  %v2287_v17 = vld [vmem:[#allocation10 + $0x20] ss:$8 sps:$4 sm:$0xff]  }
 0x1e8   : > { %v3120_v18 = vpop.f32.mrb[24].mxu0 }
 0x1e9   : > { %v3122_v19 = vpop.f32.mrb[25].mxu0 }
 0x1ea   : > { %3753 = vst [vmem:[#allocation27_spill] sm:$0xff] %v3122_v19  ;;  %v3124_v20 = vpop.f32.mrb[26].mxu0 }
 0x1eb   : > { %v3128_v22 = vpop.f32.mrb[27].mxu0 }
 0x1ec   : > { %3755 = vst [vmem:[#allocation29_spill] sm:$0xff] %v3128_v22 }
 0x1f0   : > { %v3130_v23 = vpop.f32.mrb[28].mxu0 }
 0x1f1   : > { %v3132_v24 = vpop.f32.mrb[29].mxu0 }
 0x1f2   : > { %3756 = vst [vmem:[#allocation30_spill] sm:$0xff] %v3132_v24  ;;  %v3134_v25 = vpop.f32.mrb[30].mxu0 }
 0x1f3   : > { %v3136_v26 = vpop.f32.mrb[31].mxu0 }
 0x1f4   : > { %3757 = vst [vmem:[#allocation31_spill] sm:$0xff] %v3136_v26 }
 0x1f8   : > { %v706_v27 = vpop.f32.mrb[32].mxu0 }
 0x1f9   : > { %v881_v29 = vmul.f32 %v706_v27, %v706_v27  ;;  %v3140_v30 = vpop.f32.mrb[33].mxu0 }
 0x1fa   : > { %v710_v33 = vpop.f32.mrb[34].mxu0 }
 0x1fb   : > { %v3144_v41 = vadd.f32 %v881_v29, %v865_v28  ;;  %v882_v42 = vmul.f32 %v710_v33, %v710_v33  ;;  %v3146_v45 = vpop.f32.mrb[35].mxu0 }
 0x1fd   : > { %v3148_v52 = vadd.f32 %v882_v42, %v866_v40  ;;  %v869_v40 = vmul.f32 %v646_v55, %v646_v55 }
 0x200   : > { %v716_v53 = vpop.f32.mrb[36].mxu0 }
 0x201   : > { %v883_v57 = vmul.f32 %v716_v53, %v716_v53  ;;  %v3152_v31 = vpop.f32.mrb[37].mxu0 }
 0x202   : > { %v720_v1 = vpop.f32.mrb[38].mxu0 }
 0x203   : > { %v3156_v27 = vadd.f32 %v883_v57, %v867_v54  ;;  %v884_v36 = vmul.f32 %v720_v1, %v720_v1  ;;  %v3158_v28 = vpop.f32.mrb[39].mxu0  ;;  %v871_v57 = vmul.f32 %v656_v3, %v656_v3  ;;  %v921_v3 = vmul.f32 %v3056_v32, %v3056_v32 }
 0x205   : > { %v3160_v29 = vadd.f32 %v884_v36, %v868_v2  ;;  %v872_v36 = vmul.f32 %v660_v7, %v660_v7 }
 0x208   : > { %v726_v33 = vpop.f32.mrb[40].mxu0 }
 0x209   : > { %v885_v42 = vmul.f32 %v726_v33, %v726_v33  ;;  %v3162_v0 = vpop.f32.mrb[41].mxu0 }
 0x20a   : > { %v730_v53 = vpop.f32.mrb[42].mxu0 }
 0x20b   : > { %v3164_v26 = vadd.f32 %v885_v42, %v869_v40  ;;  %v886_v6 = vmul.f32 %v730_v53, %v730_v53  ;;  %v3166_v24 = vpop.f32.mrb[43].mxu0  ;;  %v873_v42 = vmul.f32 %v666_v10, %v666_v10 }
 0x20d   : > { %v3168_v48 = vadd.f32 %v886_v6, %v870_v21  ;;  %v874_v21 = vmul.f32 %v670_v12, %v670_v12  ;;  %v923_v12 = vmul.f32 %v3072_v44, %v3072_v44 }
 0x210   : > { %v736_v54 = vpop.f32.mrb[44].mxu0 }
 0x211   : > { %v887_v1 = vmul.f32 %v736_v54, %v736_v54  ;;  %v3170_v2 = vpop.f32.mrb[45].mxu0 }
 0x212   : > { %v740_v55 = vpop.f32.mrb[46].mxu0 }
 0x213   : > { %v3172_v33 = vadd.f32 %v887_v1, %v871_v57  ;;  %v888_v63 = vmul.f32 %v740_v55, %v740_v55  ;;  %v3174_v22 = vpop.f32.mrb[47].mxu0  ;;  %v922_v57 = vmul.f32 %v3064_v37, %v3064_v37 }
 0x215   : > { %v3176_v60 = vadd.f32 %v888_v63, %v872_v36  ;;  %v875_v36 = vmul.f32 %v3112_v14, %v3112_v14 }
 0x218   : > { %v746_v40 = vpop.f32.mrb[48].mxu0 }
 0x219   : > { %v889_v53 = vmul.f32 %v746_v40, %v746_v40  ;;  %v3178_v43 = vpop.f32.mrb[49].mxu0 }
 0x21a   : > { %v750_v6 = vpop.f32.mrb[50].mxu0 }
 0x21b   : > { %v905_v54 = vadd.f32 %v889_v53, %v873_v42  ;;  %v890_v59 = vmul.f32 %v750_v6, %v750_v6  ;;  %v3182_v7 = vpop.f32.mrb[51].mxu0  ;;  %v876_v53 = vmul.f32 %v3116_v16, %v3116_v16  ;;  %v924_v6 = vmul.f32 %v3080_v49, %v3080_v49 }
 0x21c   : > { %v925_v49 = vmul.f32 %v3086_v56, %v3086_v56 }
 0x21d   : > { %v906_v1 = vadd.f32 %v890_v59, %v874_v21  ;;  %v937_v63 = vadd.f32 %v921_v3, %v905_v54 }
 0x21f   : > { %2305 = vrsqrt.f32 %v937_v63  ;;  %v938_v55 = vadd.f32 %v922_v57, %v906_v1  ;;  %v877_v1 = vmul.f32 %v3120_v18, %v3120_v18  ;;  %vm1003_vm0 = vcmp.eq.f32.partialorder %v937_v63, inf }
 0x220   : > { %v756_v10 = vpop.f32.mrb[52].mxu0  ;;  %vm1005_vm2 = vcmp.eq.f32.partialorder %v937_v63, 0.0 }
 0x221   : > { %2307 = vrsqrt.f32 %v938_v55  ;;  %v891_v40 = vmul.f32 %v756_v10, %v756_v10  ;;  %v3188_v32 = vpop.f32.mrb[53].mxu0  ;;  %vm1010_vm1 = vcmp.eq.f32.partialorder %v938_v55, inf  ;;  %v1013_v56 = vand.u32 2147483648, %v938_v55 }
 0x222   : > { %v760_v42 = vpop.f32.mrb[54].mxu0  ;;  %vm1012_vm3 = vcmp.eq.f32.partialorder %v938_v55, 0.0 }
 0x223   : > { %v907_v37 = vadd.f32 %v891_v40, %v875_v36  ;;  %v892_v59 = vmul.f32 %v760_v42, %v760_v42  ;;  %v3194_v3 = vpop.f32.mrb[55].mxu0  ;;  %v926_v40 = vmul.f32 %v3092_v61, %v3092_v61 }
 0x224   : > { %3758 = vst [vmem:[#allocation32_spill] sm:$0xff] %v3194_v3 }
 0x225   : > { %v908_v21 = vadd.f32 %v892_v59, %v876_v53  ;;  %v3198_v14 = vadd.f32 %v923_v12, %v907_v37  ;;  %v878_v53 = vmul.f32 %v3124_v20, %v3124_v20 }
 0x227   : > { %2309 = vrsqrt.f32 %v3198_v14  ;;  %v3201_v54 = vadd.f32 %v924_v6, %v908_v21  ;;  %v1006_v21 = vand.u32 2147483648, %v937_v63  ;;  %vm1017_vm4 = vcmp.eq.f32.partialorder %v3198_v14, inf }
 0x228   : > { %v766_v57 = vpop.f32.mrb[56].mxu0  ;;  %vm1019_vm6 = vcmp.eq.f32.partialorder %v3198_v14, 0.0 }
 0x229   : > { %v2306_v44 = vpop.eup %2305  ;;  %2311 = vrsqrt.f32 %v3201_v54  ;;  %v893_v16 = vmul.f32 %v766_v57, %v766_v57  ;;  %v3206_v10 = vpop.f32.mrb[57].mxu0  ;;  %vm1024_vm5 = vcmp.eq.f32.partialorder %v3201_v54, inf  ;;  %vm1026_vm7 = vcmp.eq.f32.partialorder %v3201_v54, 0.0 }
 0x22a   : > { %3759 = vst [vmem:[#allocation33_spill] sm:$0xff] %v3206_v10  ;;  %v770_v36 = vpop.f32.mrb[58].mxu0  ;;  %v1002_v12 = vmul.f32 %v2306_v44, %v937_v63 }
 0x22b   : > { %v2308_v42 = vpop.eup %2307  ;;  %v909_v37 = vadd.f32 %v893_v16, %v877_v1  ;;  %v894_v59 = vmul.f32 %v770_v36, %v770_v36  ;;  %v3214_v18 = vpop.f32.mrb[59].mxu0 }
 0x22c   : > { %3760 = vst [vmem:[#allocation34_spill] sm:$0xff] %v3214_v18  ;;  %v1004_v6 = vsel %vm1003_vm0, %v937_v63, %v1002_v12  ;;  %v1009_v57 = vmul.f32 %v2308_v42, %v938_v55  ;;  %v2281_v18 = vld [vmem:[#allocation10] ss:$8 sps:$4 sm:$0xff]  }
 0x22d   : > { %v910_v10 = vadd.f32 %v894_v59, %v878_v53  ;;  %v3216_v19 = vadd.f32 %v925_v49, %v909_v37  ;;  %v3219_v20 = vsel %vm1005_vm2, %v1006_v21, %v1004_v6  ;;  %v879_v49 = vmul.f32 %v3130_v23, %v3130_v23 }
 0x22e   : > { %v1011_v61 = vsel %vm1010_vm1, %v938_v55, %v1009_v57  ;;  %v927_v55 = vmul.f32 %v3098_v4, %v3098_v4  ;;  %v880_v59 = vmul.f32 %v3134_v25, %v3134_v25  ;;  %v1020_v4 = vand.u32 2147483648, %v3198_v14 }
 0x22f   : > { %2313 = vrsqrt.f32 %v3216_v19  ;;  %v942_v44 = vadd.f32 %v926_v40, %v910_v10  ;;  %v3221_v1 = vsel %vm1012_vm3, %v1013_v56, %v1011_v61  ;;  %v928_v40 = vmul.f32 %v3104_v8, %v3104_v8 }
 0x230   : > { %v776_v16 = vpop.f32.mrb[60].mxu0  ;;  %vm1031_vm8 = vcmp.eq.f32.partialorder %v3216_v19, inf  ;;  %vm1033_vm10 = vcmp.eq.f32.partialorder %v3216_v19, 0.0 }
 0x231   : > { %v2310_v12 = vpop.eup %2309  ;;  %2315 = vrsqrt.f32 %v942_v44  ;;  %v895_v42 = vmul.f32 %v776_v16, %v776_v16  ;;  %v3227_v63 = vpop.f32.mrb[61].mxu0  ;;  %v1027_v16 = vand.u32 2147483648, %v3201_v54  ;;  %vm1038_vm9 = vcmp.eq.f32.partialorder %v942_v44, inf }
 0x232   : > { %3761 = vst [vmem:[#allocation35_spill] sm:$0xff] %v3227_v63  ;;  %v780_v10 = vpop.f32.mrb[62].mxu0  ;;  %v1016_v53 = vmul.f32 %v2310_v12, %v3198_v14  ;;  %vm1040_vm11 = vcmp.eq.f32.partialorder %v942_v44, 0.0 }
 0x233   : > { %v2312_v37 = vpop.eup %2311  ;;  %v911_v6 = vadd.f32 %v895_v42, %v879_v49  ;;  %v896_v21 = vmul.f32 %v780_v10, %v780_v10  ;;  %v3236_v23 = vpop.f32.mrb[63].mxu0 }
 0x234   : > { %3762 = vst [vmem:[#allocation36_spill] sm:$0xff] %v3236_v23  ;;  %v1018_v57 = vsel %vm1017_vm4, %v3198_v14, %v1016_v53  ;;  %v1023_v56 = vmul.f32 %v2312_v37, %v3201_v54  ;;  %v1058_v23 = vld [vmem:[%s2958_s17 + $0x8] sm:$0xff] }
 0x235   : > { %v912_v61 = vadd.f32 %v896_v21, %v880_v59  ;;  %v3242_v8 = vadd.f32 %v927_v55, %v911_v6  ;;  %v3250_v49 = vsel %vm1019_vm6, %v1020_v4, %v1018_v57 }
 0x236   : > { %v1025_v25 = vsel %vm1024_vm5, %v3201_v54, %v1023_v56 }
 0x237   : > { %2317 = vrsqrt.f32 %v3242_v8  ;;  %v944_v12 = vadd.f32 %v928_v40, %v912_v61  ;;  %v3252_v42 = vsel %vm1026_vm7, %v1027_v16, %v1025_v25  ;;  %v1034_v16 = vand.u32 2147483648, %v3216_v19 }
 0x238   : > { %v786_v10 = vpop.f32.mrb[64].mxu0  ;;  %vm1045_vm12 = vcmp.eq.f32.partialorder %v3242_v8, inf  ;;  %vm1047_vm14 = vcmp.eq.f32.partialorder %v3242_v8, 0.0 }
 0x239   : > { %v2314_v53 = vpop.eup %2313  ;;  %2319 = vrsqrt.f32 %v944_v12  ;;  %v913_v37 = vmul.f32 %v786_v10, %v786_v10  ;;  %v3256_v59 = vpop.f32.mrb[65].mxu0  ;;  %v1041_v10 = vand.u32 2147483648, %v942_v44  ;;  %vm1052_vm13 = vcmp.eq.f32.partialorder %v944_v12, inf }
 0x23a   : > { %v790_v14 = vpop.f32.mrb[66].mxu0  ;;  %v1030_v6 = vmul.f32 %v2314_v53, %v3216_v19  ;;  %vm1054_vm15 = vcmp.eq.f32.partialorder %v944_v12, 0.0 }
 0x23b   : > { %v2316_v54 = vpop.eup %2315  ;;  %v3260_v21 = vadd.f32 %v913_v37, %v3144_v41  ;;  %v914_v40 = vmul.f32 %v790_v14, %v790_v14  ;;  %v3262_v57 = vpop.f32.mrb[67].mxu0 }
 0x23c   : > { %v1037_v4 = vmul.f32 %v2316_v54, %v942_v44  ;;  %v1032_v61 = vsel %vm1031_vm8, %v3216_v19, %v1030_v6 }
 0x23d   : > { %2321 = vrsqrt.f32 %v3260_v21  ;;  %v3267_v56 = vadd.f32 %v914_v40, %v3148_v52  ;;  %v3273_v53 = vsel %vm1033_vm10, %v1034_v16, %v1032_v61  ;;  %vm947_vm0 = vcmp.eq.f32.partialorder %v3260_v21, inf }
 0x23e   : > { %v1039_v25 = vsel %vm1038_vm9, %v942_v44, %v1037_v4  ;;  %vm949_vm2 = vcmp.eq.f32.partialorder %v3260_v21, 0.0 }
 0x23f   : > { %2323 = vrsqrt.f32 %v3267_v56  ;;  %v3275_v37 = vsel %vm1040_vm11, %v1041_v10, %v1039_v25  ;;  %v1048_v10 = vand.u32 2147483648, %v3242_v8  ;;  %vm954_vm1 = vcmp.eq.f32.partialorder %v3267_v56, inf }
 0x240   : > { %v796_v41 = vpop.f32.mrb[68].mxu0  ;;  %vm956_vm3 = vcmp.eq.f32.partialorder %v3267_v56, 0.0 }
 0x241   : > { %v2318_v14 = vpop.eup %2317  ;;  %v915_v52 = vmul.f32 %v796_v41, %v796_v41  ;;  %v3277_v54 = vpop.f32.mrb[69].mxu0  ;;  %v1055_v41 = vand.u32 2147483648, %v944_v12 }
 0x242   : > { %v800_v40 = vpop.f32.mrb[70].mxu0  ;;  %v1044_v4 = vmul.f32 %v2318_v14, %v3242_v8 }
 0x243   : > { %v2320_v55 = vpop.eup %2319  ;;  %v3283_v36 = vadd.f32 %v915_v52, %v3156_v27  ;;  %v916_v19 = vmul.f32 %v800_v40, %v800_v40  ;;  %v3285_v44 = vpop.f32.mrb[71].mxu0 }
 0x244   : > { %v1051_v61 = vmul.f32 %v2320_v55, %v944_v12  ;;  %v1046_v25 = vsel %vm1045_vm12, %v3242_v8, %v1044_v4 }
 0x245   : > { %2325 = vrsqrt.f32 %v3283_v36  ;;  %v3290_v16 = vadd.f32 %v916_v19, %v3160_v29  ;;  %v3297_v29 = vsel %vm1047_vm14, %v1048_v10, %v1046_v25  ;;  %vm961_vm4 = vcmp.eq.f32.partialorder %v3283_v36, inf }
 0x246   : > { %v1053_v27 = vsel %vm1052_vm13, %v944_v12, %v1051_v61  ;;  %v1057_v61 = vld [vmem:[%s2958_s17] sm:$0xff]  ;;  %vm963_vm6 = vcmp.eq.f32.partialorder %v3283_v36, 0.0 }
 0x247   : > { %v2322_v14 = vpop.eup %2321  ;;  %2327 = vrsqrt.f32 %v3290_v16  ;;  %v3299_v40 = vsel %vm1054_vm15, %v1055_v41, %v1053_v27  ;;  %vm968_vm5 = vcmp.eq.f32.partialorder %v3290_v16, inf  ;;  %vm970_vm7 = vcmp.eq.f32.partialorder %v3290_v16, 0.0 }
 0x248   : > { %v806_v55 = vpop.f32.mrb[72].mxu0  ;;  %v946_v52 = vmul.f32 %v2322_v14, %v3260_v21  ;;  %v950_v14 = vand.u32 2147483648, %v3260_v21 }
 0x249   : > { %v2324_v4 = vpop.eup %2323  ;;  %v917_v19 = vmul.f32 %v806_v55, %v806_v55  ;;  %v3301_v6 = vpop.f32.mrb[73].mxu0  ;;  %v957_v55 = vand.u32 2147483648, %v3267_v56 }
 0x24a   : > { %v810_v8 = vpop.f32.mrb[74].mxu0  ;;  %v948_v12 = vsel %vm947_vm0, %v3260_v21, %v946_v52  ;;  %v953_v25 = vmul.f32 %v2324_v4, %v3267_v56  ;;  %v1073_v52 = vpack.c.bf16 %v1058_v23, %v1057_v61  ;;  %v2286_v21 = vld [vmem:[#allocation10 + $0x14] ss:$8 sps:$4 sm:$0xff]  }
 0x24b   : > { %v3312_v10 = vadd.f32 %v917_v19, %v3164_v26  ;;  %v918_v27 = vmul.f32 %v810_v8, %v810_v8  ;;  %v3314_v41 = vpop.f32.mrb[75].mxu0  ;;  %v951_v26 = vsel %vm949_vm2, %v950_v14, %v948_v12  ;;  %v1060_v12 = vld [vmem:[%s2958_s17 + $0x18] sm:$0xff] }
 0x24c   : > { %v955_v63 = vsel %vm954_vm1, %v3267_v56, %v953_v25 }
 0x24d   : > { %2329 = vrsqrt.f32 %v3312_v10  ;;  %v3323_v4 = vadd.f32 %v918_v27, %v3168_v48  ;;  %v958_v19 = vsel %vm956_vm3, %v957_v55, %v955_v63  ;;  %v1059_v48 = vld [vmem:[%s2958_s17 + $0x10] sm:$0xff]  ;;  %v964_v27 = vand.u32 2147483648, %v3283_v36 }
 0x24e   : > { %v1081_v8 = vpack.c.bf16 %v958_v19, %v951_v26  ;;  %v2284_v26 = vld [vmem:[#allocation10 + $0x10] ss:$8 sps:$4 sm:$0xff]   ;;  %vm975_vm8 = vcmp.eq.f32.partialorder %v3312_v10, inf  ;;  %vm977_vm10 = vcmp.eq.f32.partialorder %v3312_v10, 0.0 }
 0x24f   : > { %v2326_v51 = vpop.eup %2325  ;;  %2331 = vrsqrt.f32 %v3323_v4  ;;  %vm982_vm9 = vcmp.eq.f32.partialorder %v3323_v4, inf  ;;  %vm984_vm11 = vcmp.eq.f32.partialorder %v3323_v4, 0.0 }
 0x250   : > { %v816_v3 = vpop.f32.mrb[76].mxu0  ;;  %1256 = vmatprep.mubr.bf16.mxu1 %v1081_v8  ;;  %v960_v56 = vmul.f32 %v2326_v51, %v3283_v36  ;;  %v2289_v8 = vld [vmem:[#allocation10 + $0x24] ss:$8 sps:$4 sm:$0xff]  }
 0x251   : > { %v2328_v23 = vpop.eup %2327  ;;  %v919_v61 = vmul.f32 %v816_v3, %v816_v3  ;;  %v3327_v25 = vpop.f32.mrb[77].mxu0  ;;  %1257 = vmatmul.mubr.bf16.vlgmr.msra.gmra.mrb[16].mxu1 %v1073_v52  ;;  %v971_v52 = vand.u32 2147483648, %v3290_v16 }
 0x252   : > { %v820_v63 = vpop.f32.mrb[78].mxu0  ;;  %v962_v14 = vsel %vm961_vm4, %v3283_v36, %v960_v56  ;;  %v967_v55 = vmul.f32 %v2328_v23, %v3290_v16  ;;  %1550 = vmatpush1.bf16.msra.mxu1 %v2281_v18  ;;  %v1074_v18 = vpack.c.bf16 %v1060_v12, %v1059_v48  ;;  %v2292_v36 = vld [vmem:[#allocation10 + $0x34] ss:$8 sps:$4 sm:$0xff]   ;;  %v1061_v12 = vld [vmem:[%s2958_s17 + $0x20] sm:$0xff] }
 0x253   : > { %v3336_v51 = vadd.f32 %v919_v61, %v3172_v33  ;;  %v920_v3 = vmul.f32 %v820_v63, %v820_v63  ;;  %v3338_v19 = vpop.f32.mrb[79].mxu0  ;;  %1551 = vmatprep.subr.bf16.mxu1 %v2286_v21  ;;  %v965_v23 = vsel %vm963_vm6, %v964_v27, %v962_v14  ;;  %v1062_v14 = vld [vmem:[%s2958_s17 + $0x28] sm:$0xff]  ;;  %v2290_v27 = vld [vmem:[#allocation10 + $0x30] ss:$8 sps:$4 sm:$0xff]  }
 0x254   : > { %v969_v56 = vsel %vm968_vm5, %v3290_v16, %v967_v55 }
 0x255   : > { %2333 = vrsqrt.f32 %v3336_v51  ;;  %v936_v33 = vadd.f32 %v920_v3, %v3176_v60  ;;  %v972_v61 = vsel %vm970_vm7, %v971_v52, %v969_v56  ;;  %v985_v3 = vand.u32 2147483648, %v3323_v4 }
 0x256   : > { %v1082_v63 = vpack.c.bf16 %v972_v61, %v965_v23  ;;  %1552 = vmatpush1.bf16.msra.mxu1 %v2284_v26  ;;  %v978_v26 = vand.u32 2147483648, %v3312_v10  ;;  %vm989_vm12 = vcmp.eq.f32.partialorder %v3336_v51, inf  ;;  %vm991_vm14 = vcmp.eq.f32.partialorder %v3336_v51, 0.0 }
 0x257   : > { %v2330_v21 = vpop.eup %2329  ;;  %2335 = vrsqrt.f32 %v936_v33  ;;  %1553 = vmatprep.subr.bf16.mxu1 %v2289_v8  ;;  %vm996_vm13 = vcmp.eq.f32.partialorder %v936_v33, inf  ;;  %vm998_vm15 = vcmp.eq.f32.partialorder %v936_v33, 0.0 }
 0x258   : > { %1264 = vmatprep.mubr.bf16.mxu1 %v1082_v63  ;;  %v974_v55 = vmul.f32 %v2330_v21, %v3312_v10 }
 0x259   : > { %v2332_v16 = vpop.eup %2331  ;;  %1265 = vmatmul.mubr.bf16.gmra.mrb[20].mxu1 %v1074_v18  ;;  %v1075_v18 = vpack.c.bf16 %v1062_v14, %v1061_v12 }
 0x25a   : > { %v976_v60 = vsel %vm975_vm8, %v3312_v10, %v974_v55  ;;  %v981_v48 = vmul.f32 %v2332_v16, %v3323_v4  ;;  %1554 = vmatpush1.bf16.msra.mxu1 %v2287_v17  ;;  %v992_v55 = vand.u32 2147483648, %v3336_v51  ;;  %v999_v16 = vand.u32 2147483648, %v936_v33 }
 0x25b   : > { %1555 = vmatprep.subr.bf16.mxu1 %v2292_v36  ;;  %v979_v8 = vsel %vm977_vm10, %v978_v26, %v976_v60  ;;  %v1063_v36 = vld [vmem:[%s2958_s17 + $0x30] sm:$0xff]  ;;  %v3763_v26 = vpack.c.bf16 %v3221_v1, %v3219_v20  ;;  %v1069_v20 = vld [vmem:[%s2958_s17 + $0x60] sm:$0xff]  ;;  %v1070_v1 = vld [vmem:[%s2958_s17 + $0x68] sm:$0xff] }
 0x25c   : > { %v983_v52 = vsel %vm982_vm9, %v3323_v4, %v981_v48  ;;  %v1064_v4 = vld [vmem:[%s2958_s17 + $0x38] sm:$0xff] }
 0x25d   : > { %v986_v56 = vsel %vm984_vm11, %v985_v3, %v983_v52  ;;  %v1076_v14 = vpack.c.bf16 %v1064_v4, %v1063_v36  ;;  %v1065_v3 = vld [vmem:[%s2958_s17 + $0x40] sm:$0xff]  ;;  %v1066_v52 = vld [vmem:[%s2958_s17 + $0x48] sm:$0xff] }
 0x25e   : > { %v1083_v17 = vpack.c.bf16 %v986_v56, %v979_v8  ;;  %1556 = vmatpush1.bf16.msra.mxu1 %v2290_v27  ;;  %v1067_v8 = vld [vmem:[%s2958_s17 + $0x50] sm:$0xff]  ;;  %v1068_v56 = vld [vmem:[%s2958_s17 + $0x58] sm:$0xff]  ;;  %v2293_v36 = vld [vmem:[#allocation10 + $0x40] ss:$8 sps:$4 sm:$0xff]  }
 0x25f   : > { %v2334_v23 = vpop.eup %2333  ;;  %v2301_v4 = vld [vmem:[#allocation10 + $0x64] ss:$8 sps:$4 sm:$0xff]  }
 0x260   : > { %1272 = vmatprep.mubr.bf16.mxu1 %v1083_v17  ;;  %v988_v61 = vmul.f32 %v2334_v23, %v3336_v51  ;;  %v3765_v17 = vpack.c.bf16 %v3275_v37, %v3273_v53  ;;  %v1079_v23 = vpack.c.bf16 %v1070_v1, %v1069_v20  ;;  %v2298_v53 = vld [vmem:[#allocation10 + $0x54] ss:$8 sps:$4 sm:$0xff]   ;;  %v2296_v37 = vld [vmem:[#allocation10 + $0x50] ss:$8 sps:$4 sm:$0xff]  }
 0x261   : > { %v2336_v63 = vpop.eup %2335  ;;  %1273 = vmatmul.mubr.bf16.gmra.mrb[24].mxu1 %v1075_v18  ;;  %v1078_v18 = vpack.c.bf16 %v1068_v56, %v1067_v8 }
 0x262   : > { %v990_v10 = vsel %vm989_vm12, %v3336_v51, %v988_v61  ;;  %v995_v21 = vmul.f32 %v2336_v63, %v936_v33  ;;  %v1077_v51 = vpack.c.bf16 %v1066_v52, %v1065_v3  ;;  %v3766_v61 = vpack.c.bf16 %v3299_v40, %v3297_v29  ;;  %v1071_v63 = vld [vmem:[%s2958_s17 + $0x70] sm:$0xff] }
 0x263   : > { %v993_v48 = vsel %vm991_vm14, %v992_v55, %v990_v10  ;;  %v1072_v10 = vld [vmem:[%s2958_s17 + $0x78] sm:$0xff]  ;;  %v2299_v55 = vld [vmem:[#allocation10 + $0x60] ss:$8 sps:$4 sm:$0xff]  }
 0x264   : > { %v997_v60 = vsel %vm996_vm13, %v936_v33, %v995_v21  ;;  %v3764_v33 = vpack.c.bf16 %v3252_v42, %v3250_v49  ;;  %v1080_v49 = vpack.c.bf16 %v1072_v10, %v1071_v63  ;;  %v3767_v42 = vmov 0   ;;  %v2295_v21 = vld [vmem:[#allocation10 + $0x44] ss:$8 sps:$4 sm:$0xff]   ;;  %v2304_v29 = vld [vmem:[#allocation10 + $0x74] ss:$8 sps:$4 sm:$0xff]  }
 0x265   : > { %v1000_v12 = vsel %vm998_vm15, %v999_v16, %v997_v60  ;;  %1557 = vmatprep.subr.bf16.mxu1 %v2295_v21  ;;  %v2302_v40 = vld [vmem:[#allocation10 + $0x70] ss:$8 sps:$4 sm:$0xff]   ;;  %v3390_v60 = vld [vmem:[%s3705_s4] ss:$0 sm:$0xff] }
 0x266   : > { %v1084_v27 = vpack.c.bf16 %v1000_v12, %v993_v48  ;;  %1558 = vmatpush1.bf16.msra.mxu1 %v2293_v36 }
 0x267   : > { %1559 = vmatprep.subr.bf16.mxu1 %v2298_v53 }
 0x268   : > { %1280 = vmatprep.mubr.bf16.mxu1 %v1084_v27 }
 0x269   : > { %1281 = vmatmul.mubr.bf16.gmra.mrb[28].mxu1 %v1076_v14 }
 0x26a   : > { %1288 = vmatprep.mubr.bf16.mxu1 %v3763_v26  ;;  %1560 = vmatpush1.bf16.msra.mxu1 %v2296_v37 }
 0x26b   : > { %1561 = vmatprep.subr.bf16.mxu1 %v2301_v4 }
 0x26e   : > { %1562 = vmatpush1.bf16.msra.mxu1 %v2299_v55 }
 0x26f   : > { %1563 = vmatprep.subr.bf16.mxu1 %v2304_v29 }
 0x271   : > { %1289 = vmatmul.mubr.bf16.gmra.mrb[32].mxu1 %v1077_v51 }
 0x272   : > { %1296 = vmatprep.mubr.bf16.mxu1 %v3764_v33  ;;  %1564 = vmatpush1.bf16.msra.mxu1 %v2302_v40 }
 0x279   : > { %1297 = vmatmul.mubr.bf16.gmra.mrb[36].mxu1 %v1078_v18 }
 0x27a   : > { %1304 = vmatprep.mubr.bf16.mxu1 %v3765_v17 }
 0x281   : > { %1305 = vmatmul.mubr.bf16.gmra.mrb[40].mxu1 %v1079_v23 }
 0x282   : > { %1312 = vmatprep.mubr.bf16.mxu1 %v3766_v61 }
 0x289   : > { %1313 = vmatmul.mubr.bf16.gmra.mrb[44].mxu1 %v1080_v49 }
 0x28a   : > { %1581 = vmatprep.mubr.bf16.mxu1 %v3767_v42 }
 0x324   : > { %v2075_v16 = vpop.f32.mrb[16].mxu1 }
 0x325   : > { %v2076_v48 = vpop.f32.mrb[17].mxu1 }
 0x326   : > { %v2077_v12 = vadd.f32 %v2076_v48, %v2075_v16  ;;  %v2078_v14 = vpop.f32.mrb[18].mxu1 }
 0x327   : > { %v2079_v27 = vpop.f32.mrb[19].mxu1 }
 0x328   : > { %v1259_v26 = vadd.f32 %v2077_v12, %v3390_v60  ;;  %v2080_v3 = vadd.f32 %v2079_v27, %v2078_v14 }
 0x32a   : > { %v2017_v52 = vmul.f32 -1.442695, %v1259_v26  ;;  %v1262_v51 = vadd.f32 %v2080_v3, %v3390_v60 }
 0x32c   : > { %2337 = vpow2.f32 %v2017_v52  ;;  %v2018_v33 = vmul.f32 -1.442695, %v1262_v51  ;;  %v2081_v8 = vpop.f32.mrb[20].mxu1 }
 0x32d   : > { %v2082_v56 = vpop.f32.mrb[21].mxu1 }
 0x32e   : > { %2339 = vpow2.f32 %v2018_v33  ;;  %v2083_v18 = vadd.f32 %v2082_v56, %v2081_v8  ;;  %v2084_v17 = vpop.f32.mrb[22].mxu1 }
 0x32f   : > { %v2085_v20 = vpop.f32.mrb[23].mxu1 }
 0x330   : > { %v3395_v1 = vadd.f32 %v2083_v18, %v3390_v60  ;;  %v2086_v23 = vadd.f32 %v2085_v20, %v2084_v17 }
 0x332   : > { %v2019_v61 = vmul.f32 -1.442695, %v3395_v1  ;;  %v3399_v63 = vadd.f32 %v2086_v23, %v3390_v60 }
 0x334   : > { %2341 = vpow2.f32 %v2019_v61  ;;  %v2020_v10 = vmul.f32 -1.442695, %v3399_v63  ;;  %v2087_v49 = vpop.f32.mrb[24].mxu1 }
 0x335   : > { %v2088_v21 = vpop.f32.mrb[25].mxu1 }
 0x336   : > { %v2338_v36 = vpop.eup %2337  ;;  %2343 = vpow2.f32 %v2020_v10  ;;  %v2089_v53 = vadd.f32 %v2088_v21, %v2087_v49  ;;  %v2090_v37 = vpop.f32.mrb[26].mxu1 }
 0x337   : > { %v1369_v4 = vadd.f32 1.0, %v2338_v36  ;;  %v2091_v55 = vpop.f32.mrb[27].mxu1 }
 0x338   : > { %v2340_v29 = vpop.eup %2339  ;;  %v3403_v40 = vadd.f32 %v2089_v53, %v3390_v60  ;;  %v2092_v16 = vadd.f32 %v2091_v55, %v2090_v37 }
 0x339   : > { %2345 = vrcp.f32 %v1369_v4  ;;  %v1370_v48 = vadd.f32 1.0, %v2340_v29 }
 0x33a   : > { %v2021_v12 = vmul.f32 -1.442695, %v3403_v40  ;;  %v3407_v14 = vadd.f32 %v2092_v16, %v3390_v60 }
 0x33b   : > { %2347 = vrcp.f32 %v1370_v48 }
 0x33c   : > { %2349 = vpow2.f32 %v2021_v12  ;;  %v2022_v27 = vmul.f32 -1.442695, %v3407_v14  ;;  %v2093_v3 = vpop.f32.mrb[28].mxu1 }
 0x33d   : > { %v2094_v52 = vpop.f32.mrb[29].mxu1 }
 0x33e   : > { %v2342_v33 = vpop.eup %2341  ;;  %2351 = vpow2.f32 %v2022_v27  ;;  %v2095_v8 = vadd.f32 %v2094_v52, %v2093_v3  ;;  %v2096_v56 = vpop.f32.mrb[30].mxu1 }
 0x33f   : > { %v1371_v18 = vadd.f32 1.0, %v2342_v33  ;;  %v2097_v17 = vpop.f32.mrb[31].mxu1 }
 0x340   : > { %v2344_v20 = vpop.eup %2343  ;;  %v3411_v23 = vadd.f32 %v2095_v8, %v3390_v60  ;;  %v2098_v61 = vadd.f32 %v2097_v17, %v2096_v56 }
 0x341   : > { %2353 = vrcp.f32 %v1371_v18  ;;  %v1372_v10 = vadd.f32 1.0, %v2344_v20 }
 0x342   : > { %v2023_v49 = vmul.f32 -1.442695, %v3411_v23  ;;  %v3415_v21 = vadd.f32 %v2098_v61, %v3390_v60 }
 0x343   : > { %v2346_v36 = vpop.eup %2345  ;;  %2355 = vrcp.f32 %v1372_v10 }
 0x344   : > { %2357 = vpow2.f32 %v2023_v49  ;;  %v2024_v53 = vmul.f32 -1.442695, %v3415_v21  ;;  %v2099_v37 = vpop.f32.mrb[32].mxu1  ;;  %v1417_v16 = vmul.f32 %v2346_v36, %v1259_v26 }
 0x345   : > { %v2348_v4 = vpop.eup %2347  ;;  %v2100_v55 = vpop.f32.mrb[33].mxu1 }
 0x346   : > { %v2350_v29 = vpop.eup %2349  ;;  %v1418_v48 = vmul.f32 %v2348_v4, %v1262_v51  ;;  %2359 = vpow2.f32 %v2024_v53  ;;  %v2101_v12 = vadd.f32 %v2100_v55, %v2099_v37  ;;  %v2102_v27 = vpop.f32.mrb[34].mxu1 }
 0x347   : > { %v1373_v3 = vadd.f32 1.0, %v2350_v29  ;;  %v2103_v52 = vpop.f32.mrb[35].mxu1 }
 0x348   : > { %v2352_v33 = vpop.eup %2351  ;;  %v1433_v8 = vpack.c.bf16 %v1418_v48, %v1417_v16  ;;  %v3419_v56 = vadd.f32 %v2101_v12, %v3390_v60  ;;  %v2104_v18 = vadd.f32 %v2103_v52, %v2102_v27 }
 0x349   : > { %2361 = vrcp.f32 %v1373_v3  ;;  %v1374_v17 = vadd.f32 1.0, %v2352_v33 }
 0x34a   : > { %v2025_v20 = vmul.f32 -1.442695, %v3419_v56  ;;  %v3423_v61 = vadd.f32 %v2104_v18, %v3390_v60  ;;  %1582 = vmatmul.mubr.bf16.vlgmr.msra.gmra.mrb[48].mxu1 %v1433_v8 }
 0x34b   : > { %v2354_v26 = vpop.eup %2353  ;;  %2363 = vrcp.f32 %v1374_v17  ;;  %1591 = vmatprep.mubr.bf16.mxu1 %v3767_v42 }
 0x34c   : > { %2365 = vpow2.f32 %v2025_v20  ;;  %v2026_v51 = vmul.f32 -1.442695, %v3423_v61  ;;  %v2105_v10 = vpop.f32.mrb[36].mxu1  ;;  %v1419_v37 = vmul.f32 %v2354_v26, %v3395_v1 }
 0x34d   : > { %v2356_v49 = vpop.eup %2355  ;;  %v2106_v36 = vpop.f32.mrb[37].mxu1 }
 0x34e   : > { %v2358_v53 = vpop.eup %2357  ;;  %v1420_v4 = vmul.f32 %v2356_v49, %v3399_v63  ;;  %2367 = vpow2.f32 %v2026_v51  ;;  %v2107_v55 = vadd.f32 %v2106_v36, %v2105_v10  ;;  %v2108_v29 = vpop.f32.mrb[38].mxu1 }
 0x34f   : > { %v1375_v16 = vadd.f32 1.0, %v2358_v53  ;;  %v2109_v48 = vpop.f32.mrb[39].mxu1 }
 0x350   : > { %v2360_v12 = vpop.eup %2359  ;;  %v3430_v27 = vadd.f32 %v2107_v55, %v3390_v60  ;;  %v2110_v3 = vadd.f32 %v2109_v48, %v2108_v29  ;;  %v1434_v52 = vpack.c.bf16 %v1420_v4, %v1419_v37 }
 0x351   : > { %2369 = vrcp.f32 %v1375_v16  ;;  %v1376_v33 = vadd.f32 1.0, %v2360_v12 }
 0x352   : > { %v2027_v8 = vmul.f32 -1.442695, %v3430_v27  ;;  %v3434_v18 = vadd.f32 %v2110_v3, %v3390_v60  ;;  %1592 = vmatmul.mubr.bf16.gmra.mrb[52].mxu1 %v1434_v52 }
 0x353   : > { %v2362_v1 = vpop.eup %2361  ;;  %2371 = vrcp.f32 %v1376_v33  ;;  %1601 = vmatprep.mubr.bf16.mxu1 %v3767_v42 }
 0x354   : > { %2373 = vpow2.f32 %v2027_v8  ;;  %v2028_v63 = vmul.f32 -1.442695, %v3434_v18  ;;  %v2111_v17 = vpop.f32.mrb[40].mxu1  ;;  %v1421_v10 = vmul.f32 %v2362_v1, %v3403_v40 }
 0x355   : > { %v2364_v20 = vpop.eup %2363  ;;  %v2112_v26 = vpop.f32.mrb[41].mxu1 }
 0x356   : > { %v2366_v51 = vpop.eup %2365  ;;  %v1422_v49 = vmul.f32 %v2364_v20, %v3407_v14  ;;  %2375 = vpow2.f32 %v2028_v63  ;;  %v2113_v36 = vadd.f32 %v2112_v26, %v2111_v17  ;;  %v2114_v53 = vpop.f32.mrb[42].mxu1 }
 0x357   : > { %v1377_v37 = vadd.f32 1.0, %v2366_v51  ;;  %v2115_v4 = vpop.f32.mrb[43].mxu1 }
 0x358   : > { %v2368_v55 = vpop.eup %2367  ;;  %v3441_v29 = vadd.f32 %v2113_v36, %v3390_v60  ;;  %v2116_v16 = vadd.f32 %v2115_v4, %v2114_v53  ;;  %v1435_v48 = vpack.c.bf16 %v1422_v49, %v1421_v10 }
 0x359   : > { %2377 = vrcp.f32 %v1377_v37  ;;  %v1378_v12 = vadd.f32 1.0, %v2368_v55 }
 0x35a   : > { %v2029_v3 = vmul.f32 -1.442695, %v3441_v29  ;;  %v1310_v52 = vadd.f32 %v2116_v16, %v3390_v60  ;;  %1602 = vmatmul.mubr.bf16.gmra.mrb[56].mxu1 %v1435_v48 }
 0x35b   : > { %v2370_v40 = vpop.eup %2369  ;;  %2379 = vrcp.f32 %v1378_v12  ;;  %1611 = vmatprep.mubr.bf16.mxu1 %v3767_v42 }
 0x35c   : > { %2381 = vpow2.f32 %v2029_v3  ;;  %v2030_v14 = vmul.f32 -1.442695, %v1310_v52  ;;  %v2117_v33 = vpop.f32.mrb[44].mxu1  ;;  %v1423_v17 = vmul.f32 %v2370_v40, %v3411_v23 }
 0x35d   : > { %v2372_v8 = vpop.eup %2371  ;;  %v2118_v1 = vpop.f32.mrb[45].mxu1 }
 0x35e   : > { %v2374_v63 = vpop.eup %2373  ;;  %v1424_v20 = vmul.f32 %v2372_v8, %v3415_v21  ;;  %2383 = vpow2.f32 %v2030_v14  ;;  %v2119_v26 = vadd.f32 %v2118_v1, %v2117_v33  ;;  %v2120_v51 = vpop.f32.mrb[46].mxu1 }
 0x35f   : > { %v1379_v10 = vadd.f32 1.0, %v2374_v63  ;;  %v2121_v49 = vpop.f32.mrb[47].mxu1 }
 0x360   : > { %v2376_v36 = vpop.eup %2375  ;;  %v1315_v53 = vadd.f32 %v2119_v26, %v3390_v60  ;;  %v2122_v37 = vadd.f32 %v2121_v49, %v2120_v51  ;;  %v1436_v4 = vpack.c.bf16 %v1424_v20, %v1423_v17 }
 0x361   : > { %2385 = vrcp.f32 %v1379_v10  ;;  %v1380_v55 = vadd.f32 1.0, %v2376_v36 }
 0x362   : > { %v2031_v16 = vmul.f32 -1.442695, %v1315_v53  ;;  %v1318_v48 = vadd.f32 %v2122_v37, %v3390_v60  ;;  %1612 = vmatmul.mubr.bf16.gmra.mrb[60].mxu1 %v1436_v4 }
 0x363   : > { %v2378_v12 = vpop.eup %2377  ;;  %2387 = vrcp.f32 %v1380_v55  ;;  %1621 = vmatprep.mubr.bf16.mxu1 %v3767_v42 }
 0x364   : > { %2389 = vpow2.f32 %v2031_v16  ;;  %v2032_v23 = vmul.f32 -1.442695, %v1318_v48  ;;  %v1425_v40 = vmul.f32 %v2378_v12, %v3419_v56 }
 0x365   : > { %v2380_v21 = vpop.eup %2379 }
 0x366   : > { %v2382_v3 = vpop.eup %2381  ;;  %v1426_v14 = vmul.f32 %v2380_v21, %v3423_v61  ;;  %2391 = vpow2.f32 %v2032_v23 }
 0x367   : > { %v1381_v33 = vadd.f32 1.0, %v2382_v3  ;;  %v1459_v3 = vlaneseq }
 0x368   : > { %v2384_v8 = vpop.eup %2383  ;;  %v1437_v1 = vpack.c.bf16 %v1426_v14, %v1425_v40 }
 0x369   : > { %2393 = vrcp.f32 %v1381_v33  ;;  %v1382_v63 = vadd.f32 1.0, %v2384_v8  ;;  %v1460_v40 = vshrl.u32 %v1459_v3, 7  ;;  %v1457_v33 = vld [vmem:[%s3707_s6] sm:$0x3] }
 0x36a   : > { %1622 = vmatmul.mubr.bf16.gmra.mrb[64].mxu1 %v1437_v1 }
 0x36b   : > { %v2386_v60 = vpop.eup %2385  ;;  %2395 = vrcp.f32 %v1382_v63  ;;  %1631 = vmatprep.mubr.bf16.mxu1 %v3767_v42  ;;  %v1461_v14 = vsub.s32 0, %v1460_v40 }
 0x36c   : > { %v1427_v26 = vmul.f32 %v2386_v60, %v3430_v27 }
 0x36d   : > { %v2388_v17 = vpop.eup %2387 }
 0x36e   : > { %v2390_v20 = vpop.eup %2389  ;;  %v1428_v51 = vmul.f32 %v2388_v17, %v3434_v18 }
 0x36f   : > { %v1383_v56 = vadd.f32 1.0, %v2390_v20 }
 0x370   : > { %v2392_v10 = vpop.eup %2391  ;;  %v1438_v61 = vpack.c.bf16 %v1428_v51, %v1427_v26 }
 0x371   : > { %2397 = vrcp.f32 %v1383_v56  ;;  %v1384_v49 = vadd.f32 1.0, %v2392_v10 }
 0x372   : > { %1632 = vmatmul.mubr.bf16.gmra.mrb[68].mxu1 %v1438_v61 }
 0x373   : > { %v2394_v36 = vpop.eup %2393  ;;  %2399 = vrcp.f32 %v1384_v49  ;;  %1641 = vmatprep.mubr.bf16.mxu1 %v3767_v42 }
 0x374   : > { %v1429_v4 = vmul.f32 %v2394_v36, %v3441_v29  ;;  %v1465_v29 = vsub.s32 1, %v1460_v40 }
 0x375   : > { %v2396_v37 = vpop.eup %2395 }
 0x376   : > { %v1430_v55 = vmul.f32 %v2396_v37, %v1310_v52  ;;  %v3462_v52 = vrot.slane %v1457_v33, %v1461_v14  ;;  %v3464_v8 = vrot.slane %v1457_v33, %v1465_v29 }
 0x378   : > { %v1439_v16 = vpack.c.bf16 %v1430_v55, %v1429_v4 }
 0x37a   : > { %1642 = vmatmul.mubr.bf16.gmra.mrb[72].mxu1 %v1439_v16 }
 0x37b   : > { %v2398_v12 = vpop.eup %2397  ;;  %1651 = vmatprep.mubr.bf16.mxu1 %v3767_v42 }
 0x37c   : > { %v1431_v18 = vmul.f32 %v2398_v12, %v1315_v53 }
 0x37d   : > { %v2400_v27 = vpop.eup %2399 }
 0x37e   : > { %v1432_v23 = vmul.f32 %v2400_v27, %v1318_v48 }
 0x380   : > { %v1440_v21 = vpack.c.bf16 %v1432_v23, %v1431_v18 }
 0x382   : > { %1652 = vmatmul.mubr.bf16.gmra.mrb[76].mxu1 %v1440_v21 }
 0x41d   : > { %v1583_v42 = vpop.f32.mrb[48].mxu1 }
 0x41e   : > { %v1584_v53 = vadd.f32 %v1583_v42, %v3462_v52  ;;  %v1585_v1 = vpop.f32.mrb[49].mxu1 }
 0x41f   : > { %v1586_v48 = vadd.f32 %v1585_v1, %v3464_v8  ;;  %v1587_v63 = vpop.f32.mrb[50].mxu1 }
 0x420   : > { %1662 = vst [vmem:[%s3470_s18] sm:$0xff] %v1584_v53  ;;  %v1588_v60 = vadd.f32 %v1587_v63, %v3462_v52  ;;  %v1589_v17 = vpop.f32.mrb[51].mxu1 }
 0x421   : > { %v1678_v20 = vmul.f32 %v1586_v48, %v3058_v34  ;;  %v1694_v26 = vmul.f32 %v1586_v48, %v3140_v30  ;;  %v1710_v51 = vmul.f32 %v1586_v48, %v3256_v59  ;;  %v1590_v56 = vadd.f32 %v1589_v17, %v3464_v8 }
 0x422   : > { %1663 = vst [vmem:[%s3470_s18 + $0x8] sm:$0xff] %v1588_v60 }
 0x423   : > { %1726 = vst [vmem:[%s3481_s0] sm:$0xff] %v1678_v20  ;;  %1727 = vst [vmem:[%s3481_s0 + $0x8] sm:$0xff] %v1694_v26  ;;  %v1679_v34 = vmul.f32 %v1590_v56, %v3066_v38  ;;  %v1695_v30 = vmul.f32 %v1590_v56, %v3146_v45  ;;  %v1711_v59 = vmul.f32 %v1590_v56, %v3262_v57 }
 0x424   : > { %1728 = vst [vmem:[%s3481_s0 + $0x10] sm:$0xff] %v1710_v51 }
 0x425   : > { %1729 = vst [vmem:[%s3481_s0 + $0x18] sm:$0xff] %v1679_v34  ;;  %1730 = vst [vmem:[%s3481_s0 + $0x20] sm:$0xff] %v1695_v30  ;;  %v1593_v10 = vpop.f32.mrb[52].mxu1 }
 0x426   : > { %1731 = vst [vmem:[%s3481_s0 + $0x28] sm:$0xff] %v1711_v59  ;;  %v1594_v61 = vadd.f32 %v1593_v10, %v3462_v52  ;;  %v1595_v49 = vpop.f32.mrb[53].mxu1 }
 0x427   : > { %v1596_v36 = vadd.f32 %v1595_v49, %v3464_v8  ;;  %v1597_v37 = vpop.f32.mrb[54].mxu1 }
 0x428   : > { %1664 = vst [vmem:[%s3470_s18 + $0x10] sm:$0xff] %v1594_v61  ;;  %v1598_v38 = vadd.f32 %v1597_v37, %v3462_v52  ;;  %v1599_v45 = vpop.f32.mrb[55].mxu1 }
 0x429   : > { %v1680_v57 = vmul.f32 %v1596_v36, %v3074_v46  ;;  %v1696_v4 = vmul.f32 %v1596_v36, %v3152_v31  ;;  %v1712_v55 = vmul.f32 %v1596_v36, %v3277_v54  ;;  %v1600_v16 = vadd.f32 %v1599_v45, %v3464_v8 }
 0x42a   : > { %1665 = vst [vmem:[%s3470_s18 + $0x18] sm:$0xff] %v1598_v38 }
 0x42b   : > { %1732 = vst [vmem:[%s3481_s0 + $0x30] sm:$0xff] %v1680_v57  ;;  %1733 = vst [vmem:[%s3481_s0 + $0x38] sm:$0xff] %v1696_v4  ;;  %v1681_v12 = vmul.f32 %v1600_v16, %v3082_v50  ;;  %v1697_v27 = vmul.f32 %v1600_v16, %v3158_v28  ;;  %v1713_v18 = vmul.f32 %v1600_v16, %v3285_v44  ;;  %v3768_v4 = vld [vmem:[#allocation26_spill] sm:$0xff]  ;;  %v3769_v16 = vld [vmem:[#allocation32_spill] sm:$0xff] }
 0x42c   : > { %1734 = vst [vmem:[%s3481_s0 + $0x40] sm:$0xff] %v1712_v55 }
 0x42d   : > { %1735 = vst [vmem:[%s3481_s0 + $0x48] sm:$0xff] %v1681_v12  ;;  %1736 = vst [vmem:[%s3481_s0 + $0x50] sm:$0xff] %v1697_v27  ;;  %v1603_v46 = vpop.f32.mrb[56].mxu1  ;;  %v3770_v27 = vld [vmem:[#allocation22_spill] sm:$0xff] }
 0x42e   : > { %1737 = vst [vmem:[%s3481_s0 + $0x58] sm:$0xff] %v1713_v18  ;;  %v1604_v31 = vadd.f32 %v1603_v46, %v3462_v52  ;;  %v1605_v54 = vpop.f32.mrb[57].mxu1 }
 0x42f   : > { %v1606_v23 = vadd.f32 %v1605_v54, %v3464_v8  ;;  %v1607_v21 = vpop.f32.mrb[58].mxu1 }
 0x430   : > { %1666 = vst [vmem:[%s3470_s18 + $0x20] sm:$0xff] %v1604_v31  ;;  %v1608_v50 = vadd.f32 %v1607_v21, %v3462_v52  ;;  %v1609_v28 = vpop.f32.mrb[59].mxu1  ;;  %v3771_v21 = vld [vmem:[#allocation27_spill] sm:$0xff] }
 0x431   : > { %v1682_v44 = vmul.f32 %v1606_v23, %v3088_v58  ;;  %v1698_v3 = vmul.f32 %v1606_v23, %v3162_v0  ;;  %v1714_v40 = vmul.f32 %v1606_v23, %v3301_v6  ;;  %v1610_v14 = vadd.f32 %v1609_v28, %v3464_v8  ;;  %v3772_v28 = vld [vmem:[#allocation33_spill] sm:$0xff] }
 0x432   : > { %1667 = vst [vmem:[%s3470_s18 + $0x28] sm:$0xff] %v1608_v50 }
 0x433   : > { %1738 = vst [vmem:[%s3481_s0 + $0x60] sm:$0xff] %v1682_v44  ;;  %1739 = vst [vmem:[%s3481_s0 + $0x68] sm:$0xff] %v1698_v3  ;;  %v1683_v33 = vmul.f32 %v1610_v14, %v3094_v62  ;;  %v1699_v29 = vmul.f32 %v1610_v14, %v3166_v24  ;;  %v1715_v42 = vmul.f32 %v1610_v14, %v3314_v41  ;;  %v3773_v3 = vld [vmem:[#allocation23_spill] sm:$0xff] }
 0x434   : > { %1740 = vst [vmem:[%s3481_s0 + $0x70] sm:$0xff] %v1714_v40 }
 0x435   : > { %1741 = vst [vmem:[%s3481_s0 + $0x78] sm:$0xff] %v1683_v33  ;;  %1742 = vst [vmem:[%s3481_s0 + $0x80] sm:$0xff] %v1699_v29  ;;  %v1613_v0 = vpop.f32.mrb[60].mxu1  ;;  %v3774_v33 = vld [vmem:[#allocation29_spill] sm:$0xff] }
 0x436   : > { %1743 = vst [vmem:[%s3481_s0 + $0x88] sm:$0xff] %v1715_v42  ;;  %v1614_v58 = vadd.f32 %v1613_v0, %v3462_v52  ;;  %v1615_v6 = vpop.f32.mrb[61].mxu1  ;;  %v3775_v42 = vld [vmem:[#allocation34_spill] sm:$0xff] }
 0x437   : > { %v1616_v53 = vadd.f32 %v1615_v6, %v3464_v8  ;;  %v1617_v1 = vpop.f32.mrb[62].mxu1 }
 0x438   : > { %1668 = vst [vmem:[%s3470_s18 + $0x30] sm:$0xff] %v1614_v58  ;;  %v1618_v62 = vadd.f32 %v1617_v1, %v3462_v52  ;;  %v1619_v24 = vpop.f32.mrb[63].mxu1  ;;  %v3776_v58 = vld [vmem:[#allocation24_spill] sm:$0xff] }
 0x439   : > { %v1684_v41 = vmul.f32 %v1616_v53, %v3100_v5  ;;  %v1700_v48 = vmul.f32 %v1616_v53, %v3170_v2  ;;  %v1716_v63 = vmul.f32 %v1616_v53, %v3327_v25  ;;  %v1620_v60 = vadd.f32 %v1619_v24, %v3464_v8 }
 0x43a   : > { %1669 = vst [vmem:[%s3470_s18 + $0x38] sm:$0xff] %v1618_v62 }
 0x43b   : > { %1744 = vst [vmem:[%s3481_s0 + $0x90] sm:$0xff] %v1684_v41  ;;  %1745 = vst [vmem:[%s3481_s0 + $0x98] sm:$0xff] %v1700_v48  ;;  %v1685_v17 = vmul.f32 %v1620_v60, %v3106_v9  ;;  %v1701_v20 = vmul.f32 %v1620_v60, %v3174_v22  ;;  %v1717_v26 = vmul.f32 %v1620_v60, %v3338_v19  ;;  %v3777_v60 = vld [vmem:[#allocation30_spill] sm:$0xff] }
 0x43c   : > { %1746 = vst [vmem:[%s3481_s0 + $0xa0] sm:$0xff] %v1716_v63 }
 0x43d   : > { %1747 = vst [vmem:[%s3481_s0 + $0xa8] sm:$0xff] %v1685_v17  ;;  %1748 = vst [vmem:[%s3481_s0 + $0xb0] sm:$0xff] %v1701_v20  ;;  %v1623_v5 = vpop.f32.mrb[64].mxu1  ;;  %v3778_v20 = vld [vmem:[#allocation35_spill] sm:$0xff] }
 0x43e   : > { %1749 = vst [vmem:[%s3481_s0 + $0xb8] sm:$0xff] %v1717_v26  ;;  %v1624_v2 = vadd.f32 %v1623_v5, %v3462_v52  ;;  %v1625_v25 = vpop.f32.mrb[65].mxu1  ;;  %v3779_v5 = vld [vmem:[#allocation25_spill] sm:$0xff] }
 0x43f   : > { %v1626_v51 = vadd.f32 %v1625_v25, %v3464_v8  ;;  %v1627_v56 = vpop.f32.mrb[66].mxu1 }
 0x440   : > { %1670 = vst [vmem:[%s3470_s18 + $0x40] sm:$0xff] %v1624_v2  ;;  %v1628_v9 = vadd.f32 %v1627_v56, %v3462_v52  ;;  %v1629_v22 = vpop.f32.mrb[67].mxu1  ;;  %v3781_v56 = vld [vmem:[#allocation36_spill] sm:$0xff] }
 0x441   : > { %v1686_v19 = vmul.f32 %v1626_v51, %v3108_v11  ;;  %v1702_v34 = vmul.f32 %v1626_v51, %v3178_v43  ;;  %v1718_v30 = vmul.f32 %v1626_v51, %v3060_v35  ;;  %v1630_v59 = vadd.f32 %v1629_v22, %v3464_v8  ;;  %v3782_v22 = vld [vmem:[#allocation28_spill] sm:$0xff] }
 0x442   : > { %1671 = vst [vmem:[%s3470_s18 + $0x48] sm:$0xff] %v1628_v9 }
 0x443   : > { %1750 = vst [vmem:[%s3481_s0 + $0xc0] sm:$0xff] %v1686_v19  ;;  %1751 = vst [vmem:[%s3481_s0 + $0xc8] sm:$0xff] %v1702_v34  ;;  %v1687_v10 = vmul.f32 %v1630_v59, %v3110_v13  ;;  %v1703_v61 = vmul.f32 %v1630_v59, %v3182_v7  ;;  %v1719_v49 = vmul.f32 %v1630_v59, %v3068_v39 }
 0x444   : > { %1752 = vst [vmem:[%s3481_s0 + $0xd0] sm:$0xff] %v1718_v30 }
 0x445   : > { %1753 = vst [vmem:[%s3481_s0 + $0xd8] sm:$0xff] %v1687_v10  ;;  %1754 = vst [vmem:[%s3481_s0 + $0xe0] sm:$0xff] %v1703_v61  ;;  %v1633_v35 = vpop.f32.mrb[68].mxu1 }
 0x446   : > { %1755 = vst [vmem:[%s3481_s0 + $0xe8] sm:$0xff] %v1719_v49  ;;  %v1634_v11 = vadd.f32 %v1633_v35, %v3462_v52  ;;  %v1635_v43 = vpop.f32.mrb[69].mxu1 }
 0x447   : > { %v1636_v36 = vadd.f32 %v1635_v43, %v3464_v8  ;;  %v1637_v37 = vpop.f32.mrb[70].mxu1 }
 0x448   : > { %1672 = vst [vmem:[%s3470_s18 + $0x50] sm:$0xff] %v1634_v11  ;;  %v1638_v39 = vadd.f32 %v1637_v37, %v3462_v52  ;;  %v1639_v13 = vpop.f32.mrb[71].mxu1 }
 0x449   : > { %v1688_v7 = vmul.f32 %v1636_v36, %v3114_v15  ;;  %v1704_v38 = vmul.f32 %v1636_v36, %v3188_v32  ;;  %v1720_v45 = vmul.f32 %v1636_v36, %v3076_v47  ;;  %v1640_v57 = vadd.f32 %v1639_v13, %v3464_v8 }
 0x44a   : > { %1673 = vst [vmem:[%s3470_s18 + $0x58] sm:$0xff] %v1638_v39 }
 0x44b   : > { %1756 = vst [vmem:[%s3481_s0 + $0xf0] sm:$0xff] %v1688_v7  ;;  %1757 = vst [vmem:[%s3481_s0 + $0xf8] sm:$0xff] %v1704_v38  ;;  %v1689_v55 = vmul.f32 %v1640_v57, %v3768_v4  ;;  %v1705_v12 = vmul.f32 %v1640_v57, %v3769_v16  ;;  %v1721_v18 = vmul.f32 %v1640_v57, %v3770_v27 }
 0x44c   : > { %1758 = vst [vmem:[%s3481_s0 + $0x100] sm:$0xff] %v1720_v45 }
 0x44d   : > { %1759 = vst [vmem:[%s3481_s0 + $0x108] sm:$0xff] %v1689_v55  ;;  %1760 = vst [vmem:[%s3481_s0 + $0x110] sm:$0xff] %v1705_v12  ;;  %v1643_v47 = vpop.f32.mrb[72].mxu1 }
 0x44e   : > { %1761 = vst [vmem:[%s3481_s0 + $0x118] sm:$0xff] %v1721_v18  ;;  %v1644_v15 = vadd.f32 %v1643_v47, %v3462_v52  ;;  %v1645_v32 = vpop.f32.mrb[73].mxu1 }
 0x44f   : > { %v1646_v46 = vadd.f32 %v1645_v32, %v3464_v8  ;;  %v1647_v31 = vpop.f32.mrb[74].mxu1 }
 0x450   : > { %1674 = vst [vmem:[%s3470_s18 + $0x60] sm:$0xff] %v1644_v15  ;;  %v1648_v54 = vadd.f32 %v1647_v31, %v3462_v52  ;;  %v1649_v23 = vpop.f32.mrb[75].mxu1 }
 0x451   : > { %v1690_v50 = vmul.f32 %v1646_v46, %v3771_v21  ;;  %v1706_v44 = vmul.f32 %v1646_v46, %v3772_v28  ;;  %v1722_v40 = vmul.f32 %v1646_v46, %v3773_v3  ;;  %v1650_v14 = vadd.f32 %v1649_v23, %v3464_v8 }
 0x452   : > { %1675 = vst [vmem:[%s3470_s18 + $0x68] sm:$0xff] %v1648_v54 }
 0x453   : > { %1762 = vst [vmem:[%s3481_s0 + $0x120] sm:$0xff] %v1690_v50  ;;  %1763 = vst [vmem:[%s3481_s0 + $0x128] sm:$0xff] %v1706_v44  ;;  %v1691_v29 = vmul.f32 %v1650_v14, %v3774_v33  ;;  %v1707_v0 = vmul.f32 %v1650_v14, %v3775_v42  ;;  %v1723_v6 = vmul.f32 %v1650_v14, %v3776_v58 }
 0x454   : > { %1764 = vst [vmem:[%s3481_s0 + $0x130] sm:$0xff] %v1722_v40 }
 0x455   : > { %1765 = vst [vmem:[%s3481_s0 + $0x138] sm:$0xff] %v1691_v29  ;;  %1766 = vst [vmem:[%s3481_s0 + $0x140] sm:$0xff] %v1707_v0  ;;  %v1653_v53 = vpop.f32.mrb[76].mxu1 }
 0x456   : > { %1767 = vst [vmem:[%s3481_s0 + $0x148] sm:$0xff] %v1723_v6  ;;  %v1654_v1 = vadd.f32 %v1653_v53, %v3462_v52  ;;  %v1655_v62 = vpop.f32.mrb[77].mxu1 }
 0x457   : > { %v1656_v24 = vadd.f32 %v1655_v62, %v3464_v8  ;;  %v1657_v41 = vpop.f32.mrb[78].mxu1 }
 0x458   : > { %1676 = vst [vmem:[%s3470_s18 + $0x70] sm:$0xff] %v1654_v1  ;;  %v1658_v48 = vadd.f32 %v1657_v41, %v3462_v52  ;;  %v1659_v63 = vpop.f32.mrb[79].mxu1  ;;  %v3780_v52 = vld [vmem:[#allocation31_spill] sm:$0xff] }
 0x459   : > { %v1692_v17 = vmul.f32 %v1656_v24, %v3777_v60  ;;  %v1708_v26 = vmul.f32 %v1656_v24, %v3778_v20  ;;  %v1724_v2 = vmul.f32 %v1656_v24, %v3779_v5  ;;  %v1660_v25 = vadd.f32 %v1659_v63, %v3464_v8 }
 0x45a   : > { %1677 = vst [vmem:[%s3470_s18 + $0x78] sm:$0xff] %v1658_v48 }
 0x45b   : > { %1768 = vst [vmem:[%s3481_s0 + $0x150] sm:$0xff] %v1692_v17  ;;  %1769 = vst [vmem:[%s3481_s0 + $0x158] sm:$0xff] %v1708_v26  ;;  %v1693_v51 = vmul.f32 %v1660_v25, %v3780_v52  ;;  %v1709_v9 = vmul.f32 %v1660_v25, %v3781_v56  ;;  %v1725_v19 = vmul.f32 %v1660_v25, %v3782_v22 }
 0x45c   : > { %1770 = vst [vmem:[%s3481_s0 + $0x160] sm:$0xff] %v1724_v2 }
 0x45d   : > { %2558 = shalt.err (!%p2555_p8)
}
 0x45e   : > { %s2559_s20 = scalar_lea.hbm %s3607_s22, 2048  ;;  %s2563_s24 = scalar_lea.hbm %s3708_s7, 8192 }
 0x45f   : > { %p2560_p0 = scmp.ne.s32.totalorder %s3607_s22, %s2559_s20  ;;  %p2564_p13 = scmp.lt.u32.totalorder %s3607_s22, %s3708_s7 }
 0x460   : > { %p2565_p3 = scmp.lt.u32.totalorder %s2563_s24, %s2559_s20  ;;  %p2567_p9 = scmp.lt.u32.totalorder %s2559_s20, %s3607_s22 }
 0x461   : > { %p2561_p2 = pnand %p2560_p0, %p2860_p11 }
 0x462   : > { %p2566_p7 = por %p2565_p3, %p2564_p13 }
 0x463   : > { %p2562_p10 = pneg %p2561_p2 }
 0x464   : > { %p2568_p12 = por %p2567_p9, %p2566_p7 }
 0x466   : > { %p2569_p5 = pnand %p2568_p12, %p2562_p10 }
 0x468   : > { %2572 = shalt.err (!%p2569_p5)
}
 0x469   : > { %s2670_s27 = smov 128   ;;  %s2671_s9 = smov 8   ;;  %1771 = vst [vmem:[%s3481_s0 + $0x168] sm:$0xff] %v1693_v51  ;;  %1772 = vst [vmem:[%s3481_s0 + $0x170] sm:$0xff] %v1709_v9 }
 0x46a   : > { %2159 = dma.vmem_to_hbm [thread:$0]  (%p2860_p11), %s3611_s16, 2048, %s3607_s22, %s1775_s13, %s2670_s27, %s2670_s27, %s2671_s9  }
 0x46b   : > { %1773 = vst [vmem:[%s3481_s0 + $0x178] sm:$0xff] %v1725_v19  ;;  %s1780_s17 = scalar_lea.sflag [#allocation13], %s2952_s15  ;;  %s2573_s2 = scalar_lea.vmem %s3624_s14, 6144 }
 0x46c   : > { %p2574_p1 = scmp.ne.s32.totalorder %s3624_s14, %s2573_s2  ;;  %s2672_s21 = smov [#allocation12]  }
 0x46d   : > { %s2577_s11 = sshll.u32 %s2672_s21, 4  ;;  %s2578_s11 = int_to_ptr.vmem [resolvable:$false] %s2577_s11 }
 0x46e   : > { %p2575_p4 = pnand %p2574_p1, %p2860_p11  ;;  %s2579_s26 = scalar_lea.vmem %s2578_s11, 12288 }
 0x46f   : > { %p2580_p8 = scmp.lt.s32.totalorder %s3624_s14, %s2578_s11  ;;  %p2581_p0 = scmp.lt.s32.totalorder %s2579_s26, %s2573_s2 }
 0x470   : > { %p2576_p6 = pneg %p2575_p4 }
 0x471   : > { %p2582_p2 = por %p2581_p0, %p2580_p8 }
 0x473   : > { %p2583_p10 = pnand %p2582_p2, %p2576_p6 }
 0x475   : > { %2586 = shalt.err (!%p2583_p10)
}
 0x476   : > { %s2587_s0 = scalar_lea.hbm %s3622_s3, 6144  ;;  %s2591_s13 = scalar_lea.hbm %s3709_s8, 24576 }
 0x477   : > { %p2588_p13 = scmp.ne.s32.totalorder %s3622_s3, %s2587_s0  ;;  %p2592_p9 = scmp.lt.u32.totalorder %s3622_s3, %s3709_s8 }
 0x478   : > { %p2593_p12 = scmp.lt.u32.totalorder %s2591_s13, %s2587_s0  ;;  %p2595_p1 = scmp.lt.u32.totalorder %s2587_s0, %s3622_s3 }
 0x479   : > { %p2589_p3 = pnand %p2588_p13, %p2860_p11 }
 0x47a   : > { %p2594_p5 = por %p2593_p12, %p2592_p9 }
 0x47b   : > { %p2590_p7 = pneg %p2589_p3 }
 0x47c   : > { %p2596_p4 = por %p2595_p1, %p2594_p5 }
 0x47e   : > { %p2597_p6 = pnand %p2596_p4, %p2590_p7 }
 0x480   : > { %2600 = shalt.err (!%p2597_p6)
}
 0x481   : > { %s2673_s18 = smov 384   ;;  %s2674_s24 = smov 24  }
 0x482   : > { %2160 = dma.vmem_to_hbm [thread:$0]  (%p2860_p11), %s3624_s14, 6144, %s3622_s3, %s1780_s17, %s2673_s18, %s2673_s18, %s2674_s24  }
 0x483 PF: > { %s3783_s23 = sld [smem:[#allocation20_spill]]  ;;  %s3784_s5 = sld [smem:[#allocation21_spill]] }
 0x484   : > { %p2194_p8 = scmp.ge.s32.totalorder %s2655_s30, 2 }
 0x489   : > { %s1825_s27 = sand.u32 1, %s3783_s23   ;;  %p3785_p0 = scmp.ne.s32.totalorder %s3784_s5, 0 }
 0x48a   : > { %s1826_s9 = scalar_lea.sflag [#allocation4], %s1825_s27 }
 0x48b   : > { %p2181_p2 = pnand %p2194_p8, %p3785_p0 }
 0x48d   : > { %2634 = dma.done.wait (!%p2181_p2), %s1826_s9, 2048  }
 0x48e   : > { %2636 = vsyncadd (!%p2181_p2), %s1826_s9, 4294965248  ;;  %s1835_s2 = scalar_lea.sflag [#allocation13], %s1825_s27 }
 0x48f   : > { %2638 = dma.done.wait (!%p2181_p2), %s1835_s2, 6144  }
 0x490   : > { %2640 = vsyncadd (!%p2181_p2), %s1835_s2, 4294961152  ;;  %p29_p11 = scmp.ge.s32.totalorder %s2825_s25, 6   ;;  %s3786_s27 = smov %s2647_s28 }
 0x491   : > { %s3787_s28 = smov %s2651_s29  ;;  %s3788_s29 = smov %s2856_s19 }
 0x492   : > { %s3789_s30 = smov %s2825_s25  ;;  %31 = sbr.rel (!%p29_p11) target bundleno = 15 (0xf), region = 135 }
 0x499   :  { %1840 = vsyncpa [#allocation3], 1 }
 0x49a   :  { %1842 = vsyncpa [#allocation3 + $0x1], 1 }
 0x49b   :  { %1843 = vsyncpa [#allocation6], 1 }
 0x49c   :  { %1845 = vsyncpa [#allocation6 + $0x1], 1 }
 0x49d   :  { %1846 = vsyncpa [#allocation9], 1 }
 0x49e   :  { %1847 = vsyncpa [#allocation4], 1 }
 0x49f   :  { %1849 = vsyncpa [#allocation4 + $0x1], 1 }
 0x4a0   :  { %1850 = vsyncpa [#allocation13], 1 }
 0x4a1   :  { %1852 = vsyncpa [#allocation13 + $0x1], 1 }

</bundles_post_ra>
